<compile_context>
chip_gen: v7x
topology: tpu7x:2x2x1
jax: 0.10.0
libtpu: 0.0.40
codegen_flags: <defaults>
</compile_context>

<pallas_src>
import functools

import jax
import jax.numpy as jnp
from jax import lax
from jax.experimental import pallas as pl
from jax.experimental.pallas import tpu as pltpu


# ------------------------------- helpers ----------------------------------- #

def _round_up(x, m):
    return (x + m - 1) // m * m


def _vmem_limits():
    """Generation-aware VMEM limit / budget (bytes)."""
    cap = 64 * 1024 * 1024                     # conservative fallback (v7x)
    try:
        info = pltpu.get_tpu_info()
        c = getattr(info, "vmem_capacity_bytes", None)
        if c:
            cap = int(c)
    except Exception:
        pass
    limit = min(int(cap * 0.75), 100 * 1024 * 1024)   # 96 MiB on 128-MiB parts, 48 MiB on v7x
    budget = int(limit * 0.8)
    return limit, budget


def _tile_candidates(n, align, allow_small_align):
    """Divisors of n that are multiples of `align` (fallback: multiples of 8),
    plus n itself (a full-extent block always satisfies the (8,128) rule)."""
    c = [d for d in range(align, n, align) if n % d == 0]
    if not c and allow_small_align:
        c = [d for d in range(8, n, 8) if n % d == 0]
    c.append(n)
    return sorted(set(c))


def _pick_tile(n, cands, bytes_fn, budget, batch, min_steps):
    """Largest candidate under the VMEM budget; shrink (staying in the candidate
    set, i.e. staying aligned) only to get enough total grid steps to pipeline."""
    fit = [d for d in cands if bytes_fn(d) <= budget]
    pool = fit if fit else [min(cands)]
    tile = max(pool)
    while batch * (n // tile) < min_steps:
        smaller = [d for d in pool if d < tile]
        if not smaller:
            break
        tile = max(smaller)
    return tile


def _pool_tile_bytes(ts, cp, ip):
    x_in = 2 * (4 * ts * cp * 4)                       # (1,4,TS,Cp) f32, double-buffered
    outs = 2 * (ip * ts * 2 + ts * ip * 2)             # phi_t + g bf16, double-buffered
    wts = 2 * (cp * 2 * ip * 2 + 2 * ip * 4)           # fused weight (bf16) + bias (f32)
    tmps = 3 * ts * 2 * ip * 4                         # acc / matmul result / cast temporaries
    return x_in + outs + wts + tmps


def _attn_tile_bytes(tq, cp, ip, ns):
    io = 2 * (2 * tq * cp * 4)                         # x in + out, double-buffered
    resid = 2 * (ip * ns * 2 + ns * ip * 2)            # resident phi_t + g (bf16, 2 bufs)
    wts = 2 * (2 * cp * ip * 2 + (ip + cp) * 4)        # theta/out weights bf16 + biases f32
    scores = tq * ns * (4 + 4 + 2)                     # f, p (f32) and p_bf16
    vecs = tq * ip * (4 + 2 + 4 + 2) + tq * cp * 4     # theta, y (+bf16 copies), wy
    return io + resid + wts + scores + vecs


# ----------------------------- Pallas kernels ------------------------------ #

def _phig_pool_kernel(x_ref, w_ref, b_ref, phit_ref, g_ref, *, ip):
    """Fused phi/g 1x1 convs (one concatenated matmul) + 2x2 max-pool.

    x_ref:    (1, 4, TS, Cp)  4 = the 2x2-window offsets of each pooled site
    w_ref:    (Cp, 2*Ip)      bf16, [w_phi | w_g] zero-padded
    b_ref:    (1, 2*Ip)       f32,  [b_phi | b_g]
    phit_ref: (1, Ip, TS)     pooled phi, pre-transposed, bf16
    g_ref:    (1, TS, Ip)     pooled g, bf16
    """
    w = w_ref[...]                                        # bf16 (Cp, 2*Ip)
    acc = None
    for k in range(4):                                    # static unroll (4 offsets)
        xk = x_ref[0, k].astype(jnp.bfloat16)             # (TS, Cp)
        pk = jnp.dot(xk, w, preferred_element_type=jnp.float32)
        acc = pk if acc is None else jnp.maximum(acc, pk)
    acc = acc + b_ref[...]                                # bias once, after the max
    phit_ref[0] = jnp.transpose(acc[:, :ip]).astype(phit_ref.dtype)   # (Ip, TS)
    g_ref[0] = acc[:, ip:].astype(g_ref.dtype)                        # (TS, Ip)


def _attn_kernel(x_ref, phit_ref, g_ref, wth_ref, bth_ref, wo_ref, shift_ref,
                 out_ref):
    """theta proj + attention + output conv (BN folded) + residual, one q-tile.

    x_ref:     (1, TQ, Cp)  residual tile (also the source of the in-kernel theta proj)
    phit_ref:  (1, Ip, Ns)  pooled phi, pre-transposed, bf16 (resident across the q axis)
    g_ref:     (1, Ns, Ip)  pooled g, bf16 (resident across the q axis)
    wth_ref:   (Cp, Ip) bf16;  bth_ref: (1, Ip) f32
    wo_ref:    (Ip, Cp) bf16   output 1x1-conv weight with BN scale folded in
    shift_ref: (1, Cp)  f32    b_W*scale + (beta - mean*scale)
    out_ref:   (1, TQ, Cp)
    """
    xv = x_ref[0]                                          # (TQ, Cp) f32
    th = jnp.dot(xv.astype(jnp.bfloat16), wth_ref[...],
                 preferred_element_type=jnp.float32) + bth_ref[...]    # (TQ, Ip)

    # scores: plain (TQ,Ip)x(Ip,Ns) dot — no per-tile transpose of phi.
    f = jnp.dot(th.astype(jnp.bfloat16), phit_ref[0],
                preferred_element_type=jnp.float32)        # (TQ, Ns)

    # softmax in f32; normalization deferred to the small (TQ, Ip) y tensor
    m = jnp.max(f, axis=-1, keepdims=True)
    p = jnp.exp(f - m)
    s = jnp.sum(p, axis=-1, keepdims=True)
    inv_s = pl.reciprocal(s, approx=True)                  # EUP slot, ~free

    y = jnp.dot(p.astype(jnp.bfloat16), g_ref[0],
                preferred_element_type=jnp.float32)        # (TQ, Ip) un-normalized
    y = (y * inv_s).astype(jnp.bfloat16)

    wy = jnp.dot(y, wo_ref[...], preferred_element_type=jnp.float32)   # (TQ, Cp)
    out_ref[0] = (wy + shift_ref[...] + xv).astype(out_ref.dtype)


# ------------------------------ host wrapper -------------------------------- #

def nonlocal_block_pallas(x_nchw, params):
    B, C, H, W = x_nchw.shape
    I = params["w_theta"].shape[1]
    N = H * W
    Hs, Ws = H // 2, W // 2
    Ns = Hs * Ws

    # Lane-dense padded dims (zero-padded weights/bias -> identical math).
    Ip = _round_up(I, 128)
    Cp = _round_up(C, 128)

    def pad_w(w):                       # (C, I) -> (Cp, Ip)
        return jnp.pad(w, ((0, Cp - C), (0, Ip - I)))

    def pad_b(b):                       # (I,) -> (1, Ip)
        return jnp.pad(b, (0, Ip - I))[None, :]

    # channels-last, channel-padded, spatially flattened row-major over (H, W)
    x_cl = jnp.transpose(x_nchw, (0, 2, 3, 1))                          # (B, H, W, C)
    x_cl = jnp.pad(x_cl, ((0, 0), (0, 0), (0, 0), (0, Cp - C)))         # (B, H, W, Cp)
    x_flat = x_cl.reshape(B, N, Cp)

    # window layout for the fused 2x2 max-pool:
    # x_win[b, dh*2+dw, h'*Ws+w', :] = x_cl[b, 2h'+dh, 2w'+dw, :]
    x_win = (x_cl.reshape(B, Hs, 2, Ws, 2, Cp)
                 .transpose(0, 2, 4, 1, 3, 5)
                 .reshape(B, 4, Ns, Cp))

    # fused phi|g weights (one matmul in kernel 1), pre-cast to bf16
    w_phig = jnp.concatenate([pad_w(params["w_phi"]),
                              pad_w(params["w_g"])], axis=1).astype(jnp.bfloat16)
    b_phig = jnp.concatenate([pad_b(params["b_phi"]),
                              pad_b(params["b_g"])], axis=1)            # (1, 2*Ip) f32

    w_th = pad_w(params["w_theta"]).astype(jnp.bfloat16)                # (Cp, Ip)
    b_th = pad_b(params["b_theta"])                                     # (1, Ip) f32

    # fold output-conv bias + inference-form BatchNorm into the output weights
    eps = 1e-5
    scale = params["bn_gamma"] / jnp.sqrt(params["bn_var"] + eps)       # (C,)
    shift = params["bn_beta"] - params["bn_mean"] * scale               # (C,)
    w_eff = jnp.pad(params["w_W"] * scale[None, :],
                    ((0, Ip - I), (0, Cp - C))).astype(jnp.bfloat16)    # (Ip, Cp)
    shift_eff = jnp.pad(params["b_W"] * scale + shift, (0, Cp - C))[None, :]  # (1, Cp)

    vmem_limit, vmem_budget = _vmem_limits()

    # ---- kernel 1: fused phi/g projection + 2x2 max-pool ----
    # TS must be a multiple of 128 or the full Ns (phi_t output's last dim).
    ts_cands = _tile_candidates(Ns, 128, allow_small_align=False)
    TS = _pick_tile(Ns, ts_cands, lambda t: _pool_tile_bytes(t, Cp, Ip),
                    vmem_budget, B, min_steps=2)

    phi_t, g_p = pl.pallas_call(
        functools.partial(_phig_pool_kernel, ip=Ip),
        out_shape=(jax.ShapeDtypeStruct((B, Ip, Ns), jnp.bfloat16),
                   jax.ShapeDtypeStruct((B, Ns, Ip), jnp.bfloat16)),
        grid=(B, Ns // TS),
        in_specs=[
            pl.BlockSpec((1, 4, TS, Cp), lambda b, t: (b, 0, t, 0)),
            pl.BlockSpec((Cp, 2 * Ip), lambda b, t: (0, 0)),
            pl.BlockSpec((1, 2 * Ip), lambda b, t: (0, 0)),
        ],
        out_specs=(
            pl.BlockSpec((1, Ip, TS), lambda b, t: (b, 0, t)),
            pl.BlockSpec((1, TS, Ip), lambda b, t: (b, t, 0)),
        ),
        compiler_params=pltpu.CompilerParams(
            dimension_semantics=("parallel", "parallel"),
            vmem_limit_bytes=vmem_limit),
    )(x_win, w_phig, b_phig)

    # ---- kernel 2: theta proj + attention + output conv/BN + residual ----
    tq_cands = _tile_candidates(N, 128, allow_small_align=True)
    TQ = _pick_tile(N, tq_cands, lambda t: _attn_tile_bytes(t, Cp, Ip, Ns),
                    vmem_budget, B, min_steps=4)

    cost = pl.CostEstimate(
        flops=int(2 * B * N * Ip * (2 * Cp + 2 * Ns)),
        transcendentals=int(B * N * Ns + B * N),
        bytes_accessed=int(2 * B * N * Cp * 4            # x read + output write
                           + 2 * B * Ns * Ip * 2         # phi_t + g
                           + (2 * Cp * Ip) * 2           # weights (bf16)
                           + (2 * Ip + 2 * Cp) * 4))     # biases / shift

    z = pl.pallas_call(
        _attn_kernel,
        out_shape=jax.ShapeDtypeStruct((B, N, Cp), jnp.float32),
        grid=(B, N // TQ),
        in_specs=[
            pl.BlockSpec((1, TQ, Cp), lambda b, q: (b, q, 0)),
            pl.BlockSpec((1, Ip, Ns), lambda b, q: (b, 0, 0)),
            pl.BlockSpec((1, Ns, Ip), lambda b, q: (b, 0, 0)),
            pl.BlockSpec((Cp, Ip), lambda b, q: (0, 0)),
            pl.BlockSpec((1, Ip), lambda b, q: (0, 0)),
            pl.BlockSpec((Ip, Cp), lambda b, q: (0, 0)),
            pl.BlockSpec((1, Cp), lambda b, q: (0, 0)),
        ],
        out_specs=pl.BlockSpec((1, TQ, Cp), lambda b, q: (b, q, 0)),
        input_output_aliases={0: 0},          # residual x aliases the output
        cost_estimate=cost,
        compiler_params=pltpu.CompilerParams(
            dimension_semantics=("parallel", "parallel"),
            vmem_limit_bytes=vmem_limit),
    )(x_flat, phi_t, g_p, w_th, b_th, w_eff, shift_eff)

    # (B, N, Cp) -> strip channel padding -> NCHW
    z = z[:, :, :C].reshape(B, H, W, C)
    return jnp.transpose(z, (0, 3, 1, 2))


# --------------------------- pure-JAX reference ----------------------------- #

def nonlocal_block_ref(x_nchw, params):
    B, C, H, W = x_nchw.shape
    I = params["w_theta"].shape[1]

    def conv1x1(x, w, b):  # x: NCHW, w: (Cin, Cout), b: (Cout,)
        return jnp.einsum("bchw,cd->bdhw", x, w) + b[None, :, None, None]

    def maxpool2x2(x):     # NCHW
        b, c, h, w = x.shape
        return jnp.max(x.reshape(b, c, h // 2, 2, w // 2, 2), axis=(3, 5))

    g_x = maxpool2x2(conv1x1(x_nchw, params["w_g"], params["b_g"]))
    g_x = g_x.reshape(B, I, -1).transpose(0, 2, 1)                     # (B, Ns, I)
    theta_x = conv1x1(x_nchw, params["w_theta"], params["b_theta"])
    theta_x = theta_x.reshape(B, I, -1).transpose(0, 2, 1)             # (B, N, I)
    phi_x = maxpool2x2(conv1x1(x_nchw, params["w_phi"], params["b_phi"]))
    phi_x = phi_x.reshape(B, I, -1)                                    # (B, I, Ns)

    f = jnp.einsum("bni,bim->bnm", theta_x, phi_x)                     # (B, N, Ns)
    f_div_C = jax.nn.softmax(f, axis=-1)
    y = jnp.einsum("bnm,bmi->bni", f_div_C, g_x)                       # (B, N, I)
    y = y.transpose(0, 2, 1).reshape(B, I, H, W)

    w_y = conv1x1(y, params["w_W"], params["b_W"])
    eps = 1e-5
    scale = params["bn_gamma"] / jnp.sqrt(params["bn_var"] + eps)
    shift = params["bn_beta"] - params["bn_mean"] * scale
    w_y = w_y * scale[None, :, None, None] + shift[None, :, None, None]
    return w_y + x_nchw


# ---------------------------------- main ------------------------------------ #

if __name__ == "__main__":
    B, C, H, W = 2, 4, 16, 16
    inter = C // 2  # = 2

    key = jax.random.PRNGKey(0)
    ks = jax.random.split(key, 12)

    params = {
        "w_g":      0.2 * jax.random.normal(ks[0], (C, inter), jnp.float32),
        "b_g":      0.1 * jax.random.normal(ks[1], (inter,), jnp.float32),
        "w_theta":  0.2 * jax.random.normal(ks[2], (C, inter), jnp.float32),
        "b_theta":  0.1 * jax.random.normal(ks[3], (inter,), jnp.float32),
        "w_phi":    0.2 * jax.random.normal(ks[4], (C, inter), jnp.float32),
        "b_phi":    0.1 * jax.random.normal(ks[5], (inter,), jnp.float32),
        "w_W":      0.2 * jax.random.normal(ks[6], (inter, C), jnp.float32),
        "b_W":      0.1 * jax.random.normal(ks[7], (C,), jnp.float32),
        # NOTE: PyTorch init sets bn_gamma = bn_beta = 0 (making W_y == 0);
        # we use non-trivial deterministic values to exercise the full path.
        "bn_gamma": 1.0 + 0.1 * jax.random.normal(ks[8], (C,), jnp.float32),
        "bn_beta":  0.1 * jax.random.normal(ks[9], (C,), jnp.float32),
        "bn_mean":  0.1 * jax.random.normal(ks[10], (C,), jnp.float32),
        "bn_var":   jnp.abs(1.0 + 0.1 * jax.random.normal(ks[11], (C,), jnp.float32)),
    }

    x = jax.random.normal(jax.random.PRNGKey(42), (B, C, H, W), jnp.float32)

    fwd = jax.jit(nonlocal_block_pallas)
    out = jax.block_until_ready(fwd(x, params))
    ref = jax.block_until_ready(nonlocal_block_ref(x, params))

    assert out.shape == (B, C, H, W)
    # bf16 MXU operands + approximate softmax reciprocal -> loosened tolerance.
    if not jnp.allclose(out, ref, rtol=3e-2, atol=3e-2):
        max_err = float(jnp.max(jnp.abs(out - ref)))
        raise AssertionError(f"Pallas kernel mismatch vs reference, max err {max_err}")

    print("KERNEL_OK")
</pallas_src>

<mosaic_0001>
module attributes {stable_mosaic.version = 11 : i64} {
  func.func @_phig_pool_kernel(%arg0: i32, %arg1: i32, %arg2: memref<1x4x64x128xf32, #tpu.memory_space<vmem>>, %arg3: memref<128x256xbf16, #tpu.memory_space<vmem>>, %arg4: memref<1x256xf32, #tpu.memory_space<vmem>>, %arg5: memref<1x128x64xbf16, #tpu.memory_space<vmem>>, %arg6: memref<1x64x128xbf16, #tpu.memory_space<vmem>>) attributes {dimension_semantics = [#tpu.dimension_semantics<parallel>, #tpu.dimension_semantics<parallel>], iteration_bounds = array<i64: 2, 1>, scalar_prefetch = 0 : i64, scratch_operands = 0 : i64, tpu.core_type = #tpu.core_type<tc>, window_params = [{transform_indices = @transform_0, window_bounds = array<i64: 1, 4, 64, 128>}, {pipeline_mode = #tpu.pipeline_mode<synchronous>, transform_indices = @transform_1, window_bounds = array<i64: 128, 256>}, {pipeline_mode = #tpu.pipeline_mode<synchronous>, transform_indices = @transform_2, window_bounds = array<i64: 1, 256>}, {transform_indices = @transform_3, window_bounds = array<i64: 1, 128, 64>}, {transform_indices = @transform_4, window_bounds = array<i64: 1, 64, 128>}]} {
    %c0 = arith.constant 0 : index
    %c0_0 = arith.constant 0 : index
    %0 = vector.load %arg3[%c0, %c0_0] : memref<128x256xbf16, #tpu.memory_space<vmem>>, vector<128x256xbf16>
    %c0_1 = arith.constant 0 : index
    %c0_2 = arith.constant 0 : index
    %c0_3 = arith.constant 0 : index
    %c0_4 = arith.constant 0 : index
    %1 = vector.load %arg2[%c0_1, %c0_2, %c0_3, %c0_4] : memref<1x4x64x128xf32, #tpu.memory_space<vmem>>, vector<1x1x64x128xf32>
    %2 = vector.shape_cast %1 : vector<1x1x64x128xf32> to vector<64x128xf32>
    %3 = arith.truncf %2 : vector<64x128xf32> to vector<64x128xbf16>
    %cst = arith.constant dense<0.000000e+00> : vector<64x256xf32>
    %4 = tpu.matmul %3, %0, %cst {dimension_numbers = #tpu.dot_dimension_numbers<[1], [0], [0], [1], [0, 0, 1, 1], [], []>} : vector<64x128xbf16>, vector<128x256xbf16>, vector<64x256xf32> -> vector<64x256xf32>
    %c0_5 = arith.constant 0 : index
    %c1 = arith.constant 1 : index
    %c0_6 = arith.constant 0 : index
    %c0_7 = arith.constant 0 : index
    %5 = vector.load %arg2[%c0_5, %c1, %c0_6, %c0_7] : memref<1x4x64x128xf32, #tpu.memory_space<vmem>>, vector<1x1x64x128xf32>
    %6 = vector.shape_cast %5 : vector<1x1x64x128xf32> to vector<64x128xf32>
    %7 = arith.truncf %6 : vector<64x128xf32> to vector<64x128xbf16>
    %cst_8 = arith.constant dense<0.000000e+00> : vector<64x256xf32>
    %8 = tpu.matmul %7, %0, %cst_8 {dimension_numbers = #tpu.dot_dimension_numbers<[1], [0], [0], [1], [0, 0, 1, 1], [], []>} : vector<64x128xbf16>, vector<128x256xbf16>, vector<64x256xf32> -> vector<64x256xf32>
    %9 = arith.maximumf %4, %8 : vector<64x256xf32>
    %c0_9 = arith.constant 0 : index
    %c2 = arith.constant 2 : index
    %c0_10 = arith.constant 0 : index
    %c0_11 = arith.constant 0 : index
    %10 = vector.load %arg2[%c0_9, %c2, %c0_10, %c0_11] : memref<1x4x64x128xf32, #tpu.memory_space<vmem>>, vector<1x1x64x128xf32>
    %11 = vector.shape_cast %10 : vector<1x1x64x128xf32> to vector<64x128xf32>
    %12 = arith.truncf %11 : vector<64x128xf32> to vector<64x128xbf16>
    %cst_12 = arith.constant dense<0.000000e+00> : vector<64x256xf32>
    %13 = tpu.matmul %12, %0, %cst_12 {dimension_numbers = #tpu.dot_dimension_numbers<[1], [0], [0], [1], [0, 0, 1, 1], [], []>} : vector<64x128xbf16>, vector<128x256xbf16>, vector<64x256xf32> -> vector<64x256xf32>
    %14 = arith.maximumf %9, %13 : vector<64x256xf32>
    %c0_13 = arith.constant 0 : index
    %c3 = arith.constant 3 : index
    %c0_14 = arith.constant 0 : index
    %c0_15 = arith.constant 0 : index
    %15 = vector.load %arg2[%c0_13, %c3, %c0_14, %c0_15] : memref<1x4x64x128xf32, #tpu.memory_space<vmem>>, vector<1x1x64x128xf32>
    %16 = vector.shape_cast %15 : vector<1x1x64x128xf32> to vector<64x128xf32>
    %17 = arith.truncf %16 : vector<64x128xf32> to vector<64x128xbf16>
    %cst_16 = arith.constant dense<0.000000e+00> : vector<64x256xf32>
    %18 = tpu.matmul %17, %0, %cst_16 {dimension_numbers = #tpu.dot_dimension_numbers<[1], [0], [0], [1], [0, 0, 1, 1], [], []>} : vector<64x128xbf16>, vector<128x256xbf16>, vector<64x256xf32> -> vector<64x256xf32>
    %19 = arith.maximumf %14, %18 : vector<64x256xf32>
    %c0_17 = arith.constant 0 : index
    %c0_18 = arith.constant 0 : index
    %20 = vector.load %arg4[%c0_17, %c0_18] : memref<1x256xf32, #tpu.memory_space<vmem>>, vector<1x256xf32>
    %21 = vector.broadcast %20 : vector<1x256xf32> to vector<64x256xf32>
    %22 = arith.addf %19, %21 : vector<64x256xf32>
    %23 = vector.extract_strided_slice %22 {offsets = [0, 0], sizes = [64, 128], strides = [1, 1]} : vector<64x256xf32> to vector<64x128xf32>
    %24 = tpu.transpose %23, [1, 0] : vector<64x128xf32> -> vector<128x64xf32>
    %25 = arith.truncf %24 : vector<128x64xf32> to vector<128x64xbf16>
    %c0_19 = arith.constant 0 : index
    %c0_20 = arith.constant 0 : index
    %c0_21 = arith.constant 0 : index
    %26 = vector.load %arg5[%c0_19, %c0_20, %c0_21] : memref<1x128x64xbf16, #tpu.memory_space<vmem>>, vector<1x128x64xbf16>
    %27 = vector.shape_cast %26 : vector<1x128x64xbf16> to vector<128x64xbf16>
    %28 = vector.shape_cast %25 : vector<128x64xbf16> to vector<1x128x64xbf16>
    tpu.vector_store %arg5[%c0_19, %c0_20, %c0_21], %28 {strides = array<i32>} : memref<1x128x64xbf16, #tpu.memory_space<vmem>>, vector<1x128x64xbf16>,
    %29 = vector.extract_strided_slice %22 {offsets = [0, 128], sizes = [64, 128], strides = [1, 1]} : vector<64x256xf32> to vector<64x128xf32>
    %30 = arith.truncf %29 : vector<64x128xf32> to vector<64x128xbf16>
    %c0_22 = arith.constant 0 : index
    %c0_23 = arith.constant 0 : index
    %c0_24 = arith.constant 0 : index
    %31 = vector.load %arg6[%c0_22, %c0_23, %c0_24] : memref<1x64x128xbf16, #tpu.memory_space<vmem>>, vector<1x64x128xbf16>
    %32 = vector.shape_cast %31 : vector<1x64x128xbf16> to vector<64x128xbf16>
    %33 = vector.shape_cast %30 : vector<64x128xbf16> to vector<1x64x128xbf16>
    tpu.vector_store %arg6[%c0_22, %c0_23, %c0_24], %33 {strides = array<i32>} : memref<1x64x128xbf16, #tpu.memory_space<vmem>>, vector<1x64x128xbf16>,
    return
  }
  func.func @transform_0(%arg0: i32, %arg1: i32) -> (i32, i32, i32, i32) {
    %c0_i32 = arith.constant 0 : i32
    %c0_i32_0 = arith.constant 0 : i32
    %c0_i32_1 = arith.constant 0 : i32
    return %arg0, %c0_i32, %arg1, %c0_i32_0 : i32, i32, i32, i32
  }
  func.func @transform_1(%arg0: i32, %arg1: i32) -> (i32, i32) {
    %c0_i32 = arith.constant 0 : i32
    %c0_i32_0 = arith.constant 0 : i32
    %c0_i32_1 = arith.constant 0 : i32
    return %c0_i32, %c0_i32_0 : i32, i32
  }
  func.func @transform_2(%arg0: i32, %arg1: i32) -> (i32, i32) {
    %c0_i32 = arith.constant 0 : i32
    %c0_i32_0 = arith.constant 0 : i32
    %c0_i32_1 = arith.constant 0 : i32
    return %c0_i32, %c0_i32_0 : i32, i32
  }
  func.func @transform_3(%arg0: i32, %arg1: i32) -> (i32, i32, i32) {
    %c0_i32 = arith.constant 0 : i32
    %c0_i32_0 = arith.constant 0 : i32
    return %arg0, %c0_i32, %arg1 : i32, i32, i32
  }
  func.func @transform_4(%arg0: i32, %arg1: i32) -> (i32, i32, i32) {
    %c0_i32 = arith.constant 0 : i32
    %c0_i32_0 = arith.constant 0 : i32
    return %arg0, %arg1, %c0_i32 : i32, i32, i32
  }
}

module attributes {stable_mosaic.version = 11 : i64} {
  func.func @_attn_kernel(%arg0: i32, %arg1: i32, %arg2: memref<1x128x128xf32, #tpu.memory_space<vmem>>, %arg3: memref<1x128x64xbf16, #tpu.memory_space<vmem>>, %arg4: memref<1x64x128xbf16, #tpu.memory_space<vmem>>, %arg5: memref<128x128xbf16, #tpu.memory_space<vmem>>, %arg6: memref<1x128xf32, #tpu.memory_space<vmem>>, %arg7: memref<128x128xbf16, #tpu.memory_space<vmem>>, %arg8: memref<1x128xf32, #tpu.memory_space<vmem>>, %arg9: memref<1x128x128xf32, #tpu.memory_space<vmem>>) attributes {dimension_semantics = [#tpu.dimension_semantics<parallel>, #tpu.dimension_semantics<parallel>], iteration_bounds = array<i64: 2, 2>, scalar_prefetch = 0 : i64, scratch_operands = 0 : i64, tpu.core_type = #tpu.core_type<tc>, window_params = [{transform_indices = @transform_0, window_bounds = array<i64: 1, 128, 128>}, {transform_indices = @transform_1, window_bounds = array<i64: 1, 128, 64>}, {transform_indices = @transform_2, window_bounds = array<i64: 1, 64, 128>}, {pipeline_mode = #tpu.pipeline_mode<synchronous>, transform_indices = @transform_3, window_bounds = array<i64: 128, 128>}, {pipeline_mode = #tpu.pipeline_mode<synchronous>, transform_indices = @transform_4, window_bounds = array<i64: 1, 128>}, {pipeline_mode = #tpu.pipeline_mode<synchronous>, transform_indices = @transform_5, window_bounds = array<i64: 128, 128>}, {pipeline_mode = #tpu.pipeline_mode<synchronous>, transform_indices = @transform_6, window_bounds = array<i64: 1, 128>}, {transform_indices = @transform_7, window_bounds = array<i64: 1, 128, 128>}]} {
    %c0 = arith.constant 0 : index
    %c0_0 = arith.constant 0 : index
    %c0_1 = arith.constant 0 : index
    %0 = vector.load %arg2[%c0, %c0_0, %c0_1] : memref<1x128x128xf32, #tpu.memory_space<vmem>>, vector<1x128x128xf32>
    %1 = vector.shape_cast %0 : vector<1x128x128xf32> to vector<128x128xf32>
    %2 = arith.truncf %1 : vector<128x128xf32> to vector<128x128xbf16>
    %c0_2 = arith.constant 0 : index
    %c0_3 = arith.constant 0 : index
    %3 = vector.load %arg5[%c0_2, %c0_3] : memref<128x128xbf16, #tpu.memory_space<vmem>>, vector<128x128xbf16>
    %cst = arith.constant dense<0.000000e+00> : vector<128x128xf32>
    %4 = tpu.matmul %2, %3, %cst {dimension_numbers = #tpu.dot_dimension_numbers<[1], [0], [0], [1], [0, 0, 1, 1], [], []>} : vector<128x128xbf16>, vector<128x128xbf16>, vector<128x128xf32> -> vector<128x128xf32>
    %c0_4 = arith.constant 0 : index
    %c0_5 = arith.constant 0 : index
    %5 = vector.load %arg6[%c0_4, %c0_5] : memref<1x128xf32, #tpu.memory_space<vmem>>, vector<1x128xf32>
    %6 = vector.broadcast %5 : vector<1x128xf32> to vector<128x128xf32>
    %7 = arith.addf %4, %6 : vector<128x128xf32>
    %8 = arith.truncf %7 : vector<128x128xf32> to vector<128x128xbf16>
    %c0_6 = arith.constant 0 : index
    %c0_7 = arith.constant 0 : index
    %c0_8 = arith.constant 0 : index
    %9 = vector.load %arg3[%c0_6, %c0_7, %c0_8] : memref<1x128x64xbf16, #tpu.memory_space<vmem>>, vector<1x128x64xbf16>
    %10 = vector.shape_cast %9 : vector<1x128x64xbf16> to vector<128x64xbf16>
    %cst_9 = arith.constant dense<0.000000e+00> : vector<128x64xf32>
    %11 = tpu.matmul %8, %10, %cst_9 {dimension_numbers = #tpu.dot_dimension_numbers<[1], [0], [0], [1], [0, 0, 1, 1], [], []>} : vector<128x128xbf16>, vector<128x64xbf16>, vector<128x64xf32> -> vector<128x64xf32>
    %cst_10 = arith.constant dense<0xFF800000> : vector<128xf32>
    %12 = vector.multi_reduction <maximumf>, %11, %cst_10 [1] : vector<128x64xf32> to vector<128xf32>
    %13 = vector.shape_cast %12 : vector<128xf32> to vector<128x1xf32>
    %14 = vector.broadcast %13 : vector<128x1xf32> to vector<128x64xf32>
    %15 = arith.subf %11, %14 : vector<128x64xf32>
    %16 = math.exp %15 : vector<128x64xf32>
    %cst_11 = arith.constant dense<0.000000e+00> : vector<128xf32>
    %17 = vector.multi_reduction <add>, %16, %cst_11 [1] : vector<128x64xf32> to vector<128xf32>
    %18 = vector.shape_cast %17 : vector<128xf32> to vector<128x1xf32>
    %19 = tpu.reciprocal %18 {approx = true} : vector<128x1xf32> -> vector<128x1xf32>
    %20 = arith.truncf %16 : vector<128x64xf32> to vector<128x64xbf16>
    %c0_12 = arith.constant 0 : index
    %c0_13 = arith.constant 0 : index
    %c0_14 = arith.constant 0 : index
    %21 = vector.load %arg4[%c0_12, %c0_13, %c0_14] : memref<1x64x128xbf16, #tpu.memory_space<vmem>>, vector<1x64x128xbf16>
    %22 = vector.shape_cast %21 : vector<1x64x128xbf16> to vector<64x128xbf16>
    %cst_15 = arith.constant dense<0.000000e+00> : vector<128x128xf32>
    %23 = tpu.matmul %20, %22, %cst_15 {dimension_numbers = #tpu.dot_dimension_numbers<[1], [0], [0], [1], [0, 0, 1, 1], [], []>} : vector<128x64xbf16>, vector<64x128xbf16>, vector<128x128xf32> -> vector<128x128xf32>
    %24 = vector.broadcast %19 : vector<128x1xf32> to vector<128x128xf32>
    %25 = arith.mulf %23, %24 : vector<128x128xf32>
    %26 = arith.truncf %25 : vector<128x128xf32> to vector<128x128xbf16>
    %c0_16 = arith.constant 0 : index
    %c0_17 = arith.constant 0 : index
    %27 = vector.load %arg7[%c0_16, %c0_17] : memref<128x128xbf16, #tpu.memory_space<vmem>>, vector<128x128xbf16>
    %cst_18 = arith.constant dense<0.000000e+00> : vector<128x128xf32>
    %28 = tpu.matmul %26, %27, %cst_18 {dimension_numbers = #tpu.dot_dimension_numbers<[1], [0], [0], [1], [0, 0, 1, 1], [], []>} : vector<128x128xbf16>, vector<128x128xbf16>, vector<128x128xf32> -> vector<128x128xf32>
    %c0_19 = arith.constant 0 : index
    %c0_20 = arith.constant 0 : index
    %29 = vector.load %arg8[%c0_19, %c0_20] : memref<1x128xf32, #tpu.memory_space<vmem>>, vector<1x128xf32>
    %30 = vector.broadcast %29 : vector<1x128xf32> to vector<128x128xf32>
    %31 = arith.addf %28, %30 : vector<128x128xf32>
    %32 = arith.addf %31, %1 : vector<128x128xf32>
    %c0_21 = arith.constant 0 : index
    %c0_22 = arith.constant 0 : index
    %c0_23 = arith.constant 0 : index
    %33 = vector.load %arg9[%c0_21, %c0_22, %c0_23] : memref<1x128x128xf32, #tpu.memory_space<vmem>>, vector<1x128x128xf32>
    %34 = vector.shape_cast %33 : vector<1x128x128xf32> to vector<128x128xf32>
    %35 = vector.shape_cast %32 : vector<128x128xf32> to vector<1x128x128xf32>
    tpu.vector_store %arg9[%c0_21, %c0_22, %c0_23], %35 {strides = array<i32>} : memref<1x128x128xf32, #tpu.memory_space<vmem>>, vector<1x128x128xf32>,
    return
  }
  func.func @transform_0(%arg0: i32, %arg1: i32) -> (i32, i32, i32) {
    %c0_i32 = arith.constant 0 : i32
    %c0_i32_0 = arith.constant 0 : i32
    return %arg0, %arg1, %c0_i32 : i32, i32, i32
  }
  func.func @transform_1(%arg0: i32, %arg1: i32) -> (i32, i32, i32) {
    %c0_i32 = arith.constant 0 : i32
    %c0_i32_0 = arith.constant 0 : i32
    %c0_i32_1 = arith.constant 0 : i32
    return %arg0, %c0_i32, %c0_i32_0 : i32, i32, i32
  }
  func.func @transform_2(%arg0: i32, %arg1: i32) -> (i32, i32, i32) {
    %c0_i32 = arith.constant 0 : i32
    %c0_i32_0 = arith.constant 0 : i32
    %c0_i32_1 = arith.constant 0 : i32
    return %arg0, %c0_i32, %c0_i32_0 : i32, i32, i32
  }
  func.func @transform_3(%arg0: i32, %arg1: i32) -> (i32, i32) {
    %c0_i32 = arith.constant 0 : i32
    %c0_i32_0 = arith.constant 0 : i32
    %c0_i32_1 = arith.constant 0 : i32
    return %c0_i32, %c0_i32_0 : i32, i32
  }
  func.func @transform_4(%arg0: i32, %arg1: i32) -> (i32, i32) {
    %c0_i32 = arith.constant 0 : i32
    %c0_i32_0 = arith.constant 0 : i32
    %c0_i32_1 = arith.constant 0 : i32
    return %c0_i32, %c0_i32_0 : i32, i32
  }
  func.func @transform_5(%arg0: i32, %arg1: i32) -> (i32, i32) {
    %c0_i32 = arith.constant 0 : i32
    %c0_i32_0 = arith.constant 0 : i32
    %c0_i32_1 = arith.constant 0 : i32
    return %c0_i32, %c0_i32_0 : i32, i32
  }
  func.func @transform_6(%arg0: i32, %arg1: i32) -> (i32, i32) {
    %c0_i32 = arith.constant 0 : i32
    %c0_i32_0 = arith.constant 0 : i32
    %c0_i32_1 = arith.constant 0 : i32
    return %c0_i32, %c0_i32_0 : i32, i32
  }
  func.func @transform_7(%arg0: i32, %arg1: i32) -> (i32, i32, i32) {
    %c0_i32 = arith.constant 0 : i32
    %c0_i32_0 = arith.constant 0 : i32
    return %arg0, %arg1, %c0_i32 : i32, i32, i32
  }
}

</mosaic_0001>

<bundles_post_ra>
// kernel: nonlocal_block_pallas.2
= control target key start
LH: loop header
LB: loop body
LE: loop exit
PB: predicated region body
PF: predicated region fallthrough
CT: control target
= control target key end

     0   :  { %s1288_s15 = smov 0   ;;  %s1290_s16 = smov 0   ;;  %s1692_s0 = inlined_call_operand.vmem [shape: f32[2,4,64,128], index: 0, kind: input, shape index: {}]   ;;  %s1693_s1 = inlined_call_operand.vmem [shape: bf16[128,256], index: 1, kind: input, shape index: {}]   ;;  %s1694_s2 = inlined_call_operand.vmem [shape: f32[1,256], index: 2, kind: input, shape index: {}]   ;;  %s1695_s3 = inlined_call_operand.vmem [shape: bf16[2,128,64], index: 3, kind: output, shape index: {0}]   ;;  %s1696_s4 = inlined_call_operand.vmem [shape: bf16[2,64,128], index: 4, kind: output, shape index: {1}]  }
   0x1   :  { %s1292_s17 = smov 0  }
   0x2 LB: > { %s27_s18 = sadd.s32 1, %s1256_s16  ;;  %p1065_p0 = scmp.ge.s32.totalorder %s1260_s17, 1  ;;  %s1260_s17 = sphi %s1292_s17, %s15_s17   ;;  %s1256_s16 = sphi %s1290_s16, %s1698_s16   ;;  %s1252_s15 = sphi %s1288_s15, %s1697_s15  }
   0x3   : > { %p29_p1 = scmp.ge.s32.totalorder %s27_s18, 2  ;;  %p188_p2 = scmp.lt.s32.totalorder %s1260_s17, 3 }
   0x5   : > { %s1700_s18 = smov (%p29_p1, %s27_s18), 0  ;;  %p189_p3 = pnand %p1065_p0, %p188_p2 }
   0x6   : > { %v1214_v0 = vld [vmem:[%s1693_s1 + $0x4] ss:$8 sps:$4 sm:$0xff] (!%p189_p3)   ;;  %v1314_v1 = vld [vmem:[%s1693_s1] ss:$8 sps:$4 sm:$0xff] (!%p189_p3)   ;;  %v1262_v2 = vmov (!%p189_p3), 0   ;;  %p231_p4 = scmp.lt.s32.totalorder (!%p189_p3), %s1252_s15, 1 }
   0x7   : > { %192 = sbr.rel (%p189_p3) target bundleno = 482 (0x1e2), region = 32  ;;  %399 = vmatprep.mubr.bf16.mxu0 (!%p189_p3), %v1262_v2  ;;  %485 = vmatprep.mubr.bf16.mxu1 (!%p189_p3), %v1262_v2  ;;  %v1321_v3 = vld [vmem:[%s1693_s1 + $0x14] ss:$8 sps:$4 sm:$0xff] (!%p189_p3)   ;;  %v1328_v4 = vld [vmem:[%s1693_s1 + $0x10] ss:$8 sps:$4 sm:$0xff] (!%p189_p3)   ;;  %vm870_vm0 = vcmask (!%p189_p3), 519168  }
   0x8   : > { %367 = vmatprep.subr.bf16.mxu0 (!%p189_p3), %v1214_v0  ;;  %453 = vmatprep.subr.bf16.mxu1 (!%p189_p3), %v1214_v0  ;;  %v1335_v5 = vld [vmem:[%s1693_s1 + $0x24] ss:$8 sps:$4 sm:$0xff] (!%p189_p3)   ;;  %v1342_v6 = vld [vmem:[%s1693_s1 + $0x20] ss:$8 sps:$4 sm:$0xff] (!%p189_p3)   ;;  %v1349_v7 = vld [vmem:[%s1693_s1 + $0x34] ss:$8 sps:$4 sm:$0xff] (!%p189_p3)  }
   0x9   : > { %368 = vmatpush1.bf16.msra.mxu0 (!%p189_p3), %v1314_v1  ;;  %454 = vmatpush1.bf16.msra.mxu1 (!%p189_p3), %v1314_v1  ;;  %v1356_v8 = vld [vmem:[%s1693_s1 + $0x30] ss:$8 sps:$4 sm:$0xff] (!%p189_p3)   ;;  %v1363_v9 = vld [vmem:[%s1693_s1 + $0x44] ss:$8 sps:$4 sm:$0xff] (!%p189_p3)   ;;  %v1371_v10 = vld [vmem:[%s1693_s1 + $0x40] ss:$8 sps:$4 sm:$0xff] (!%p189_p3)  }
   0xa   : > { %369 = vmatprep.subr.bf16.mxu0 (!%p189_p3), %v1321_v3  ;;  %455 = vmatprep.subr.bf16.mxu1 (!%p189_p3), %v1321_v3  ;;  %v1378_v11 = vld [vmem:[%s1693_s1 + $0x54] ss:$8 sps:$4 sm:$0xff] (!%p189_p3)   ;;  %v1388_v12 = vld [vmem:[%s1693_s1 + $0x50] ss:$8 sps:$4 sm:$0xff] (!%p189_p3)   ;;  %v1395_v13 = vld [vmem:[%s1693_s1 + $0x64] ss:$8 sps:$4 sm:$0xff] (!%p189_p3)  }
   0xb   : > { %v1403_v14 = vld [vmem:[%s1693_s1 + $0x60] ss:$8 sps:$4 sm:$0xff] (!%p189_p3)   ;;  %v1415_v15 = vld [vmem:[%s1693_s1 + $0x74] ss:$8 sps:$4 sm:$0xff] (!%p189_p3)   ;;  %v1420_v16 = vld [vmem:[%s1693_s1 + $0x70] ss:$8 sps:$4 sm:$0xff] (!%p189_p3)  }
   0xd   : > { %370 = vmatpush1.bf16.msra.mxu0 (!%p189_p3), %v1328_v4  ;;  %456 = vmatpush1.bf16.msra.mxu1 (!%p189_p3), %v1328_v4 }
   0xe   : > { %371 = vmatprep.subr.bf16.mxu0 %v1335_v5  ;;  %457 = vmatprep.subr.bf16.mxu1 %v1335_v5  ;;  %s1702_s15 = smov (!%p231_p4, %s1252_s15), 1 }
   0xf   : > { %s1138_s23 = sshll.u32 %s1702_s15, 8  ;;  %s1140_s9 = sshll.u32 %s1702_s15, 5 }
  0x10   : > { %s1408_s28 = scalar_lea.vmem %s1692_s0, %s1138_s23  ;;  %s1590_s12 = scalar_lea.vmem %s1696_s4, %s1140_s9 }
  0x11   : > { %372 = vmatpush1.bf16.msra.mxu0 %v1342_v6  ;;  %458 = vmatpush1.bf16.msra.mxu1 %v1342_v6  ;;  %v275_v17 = vld [vmem:[%s1408_s28] sm:$0xff]  ;;  %v276_v18 = vld [vmem:[%s1408_s28 + $0x8] sm:$0xff]  ;;  %v277_v23 = vld [vmem:[%s1408_s28 + $0x10] sm:$0xff]  ;;  %s1139_s13 = sshll.u32 %s1702_s15, 6 }
  0x12   : > { %373 = vmatprep.subr.bf16.mxu0 %v1349_v7  ;;  %459 = vmatprep.subr.bf16.mxu1 %v1349_v7  ;;  %v1088_v19 = vld [vmem:[%s1408_s28 + $0x40] sm:$0xff]  ;;  %v1089_v20 = vld [vmem:[%s1408_s28 + $0x48] sm:$0xff]  ;;  %v283_v21 = vpack.c.bf16 %v276_v18, %v275_v17  ;;  %v278_v24 = vld [vmem:[%s1408_s28 + $0x18] sm:$0xff]  ;;  %s1649_s20 = scalar_lea.vmem %s1695_s3, %s1139_s13 }
  0x13   : > { %v449_v22 = vpack.c.bf16 %v1089_v20, %v1088_v19  ;;  %v1090_v25 = vld [vmem:[%s1408_s28 + $0x50] sm:$0xff]  ;;  %v1091_v26 = vld [vmem:[%s1408_s28 + $0x58] sm:$0xff]  ;;  %v284_v27 = vpack.c.bf16 %v278_v24, %v277_v23  ;;  %v279_v29 = vld [vmem:[%s1408_s28 + $0x20] sm:$0xff] }
  0x14   : > { %v450_v28 = vpack.c.bf16 %v1091_v26, %v1090_v25  ;;  %v280_v30 = vld [vmem:[%s1408_s28 + $0x28] sm:$0xff]  ;;  %v1092_v31 = vld [vmem:[%s1408_s28 + $0x60] sm:$0xff]  ;;  %v281_v35 = vld [vmem:[%s1408_s28 + $0x30] sm:$0xff] }
  0x15   : > { %374 = vmatpush1.bf16.msra.mxu0 %v1356_v8  ;;  %460 = vmatpush1.bf16.msra.mxu1 %v1356_v8  ;;  %v1093_v32 = vld [vmem:[%s1408_s28 + $0x68] sm:$0xff]  ;;  %v285_v33 = vpack.c.bf16 %v280_v30, %v279_v29  ;;  %v282_v36 = vld [vmem:[%s1408_s28 + $0x38] sm:$0xff]  ;;  %v1094_v37 = vld [vmem:[%s1408_s28 + $0x70] sm:$0xff] }
  0x16   : > { %375 = vmatprep.subr.bf16.mxu0 %v1363_v9  ;;  %461 = vmatprep.subr.bf16.mxu1 %v1363_v9  ;;  %v451_v34 = vpack.c.bf16 %v1093_v32, %v1092_v31  ;;  %v1095_v38 = vld [vmem:[%s1408_s28 + $0x78] sm:$0xff]  ;;  %v286_v39 = vpack.c.bf16 %v282_v36, %v281_v35  ;;  %v1096_v41 = vld [vmem:[%s1408_s28 + $0x80] sm:$0xff]  ;;  %v1097_v42 = vld [vmem:[%s1408_s28 + $0x88] sm:$0xff] }
  0x17   : > { %v452_v40 = vpack.c.bf16 %v1095_v38, %v1094_v37  ;;  %v1104_v43 = vld [vmem:[%s1408_s28 + $0xc0] sm:$0xff]  ;;  %v1105_v44 = vld [vmem:[%s1408_s28 + $0xc8] sm:$0xff]  ;;  %v551_v45 = vpack.c.bf16 %v1097_v42, %v1096_v41  ;;  %v1098_v47 = vld [vmem:[%s1408_s28 + $0x90] sm:$0xff]  ;;  %v748_v37 = vlaneseq }
  0x18   : > { %v653_v46 = vpack.c.bf16 %v1105_v44, %v1104_v43  ;;  %v1099_v48 = vld [vmem:[%s1408_s28 + $0x98] sm:$0xff]  ;;  %v1106_v49 = vld [vmem:[%s1408_s28 + $0xd0] sm:$0xff]  ;;  %v1100_v53 = vld [vmem:[%s1408_s28 + $0xa0] sm:$0xff] }
  0x19   : > { %376 = vmatpush1.bf16.msra.mxu0 %v1371_v10  ;;  %462 = vmatpush1.bf16.msra.mxu1 %v1371_v10  ;;  %v1107_v50 = vld [vmem:[%s1408_s28 + $0xd8] sm:$0xff]  ;;  %v552_v51 = vpack.c.bf16 %v1099_v48, %v1098_v47  ;;  %v1101_v54 = vld [vmem:[%s1408_s28 + $0xa8] sm:$0xff]  ;;  %v1108_v55 = vld [vmem:[%s1408_s28 + $0xe0] sm:$0xff]  ;;  %v749_v43 = vshrl.u32 %v748_v37, 7 }
  0x1a   : > { %377 = vmatprep.subr.bf16.mxu0 %v1378_v11  ;;  %463 = vmatprep.subr.bf16.mxu1 %v1378_v11  ;;  %v654_v52 = vpack.c.bf16 %v1107_v50, %v1106_v49  ;;  %v1109_v56 = vld [vmem:[%s1408_s28 + $0xe8] sm:$0xff]  ;;  %v553_v57 = vpack.c.bf16 %v1101_v54, %v1100_v53  ;;  %v1102_v59 = vld [vmem:[%s1408_s28 + $0xb0] sm:$0xff]  ;;  %v1103_v60 = vld [vmem:[%s1408_s28 + $0xb8] sm:$0xff] }
  0x1b   : > { %v655_v58 = vpack.c.bf16 %v1109_v56, %v1108_v55  ;;  %v1110_v61 = vld [vmem:[%s1408_s28 + $0xf0] sm:$0xff]  ;;  %v1111_v62 = vld [vmem:[%s1408_s28 + $0xf8] sm:$0xff]  ;;  %v554_v63 = vpack.c.bf16 %v1103_v60, %v1102_v59  ;;  %v754_v55 = vsub.s32 1, %v749_v43 }
  0x1d   : > { %378 = vmatpush1.bf16.msra.mxu0 %v1388_v12  ;;  %464 = vmatpush1.bf16.msra.mxu1 %v1388_v12 }
  0x1e   : > { %379 = vmatprep.subr.bf16.mxu0 %v1395_v13  ;;  %465 = vmatprep.subr.bf16.mxu1 %v1395_v13 }
  0x21   : > { %380 = vmatpush1.bf16.msra.mxu0 %v1403_v14  ;;  %466 = vmatpush1.bf16.msra.mxu1 %v1403_v14 }
  0x22   : > { %381 = vmatprep.subr.bf16.mxu0 %v1415_v15  ;;  %467 = vmatprep.subr.bf16.mxu1 %v1415_v15 }
  0x25   : > { %382 = vmatpush1.bf16.msra.mxu0 %v1420_v16  ;;  %468 = vmatpush1.bf16.msra.mxu1 %v1420_v16 }
  0x26   : > { %555 = vmatprep.subr.bf16.mxu0 %v1214_v0  ;;  %657 = vmatprep.subr.bf16.mxu1 %v1214_v0  ;;  %v656_v0 = vpack.c.bf16 %v1111_v62, %v1110_v61 }
  0x28   : > { %400 = vmatmul.mubr.bf16.vlgmr.msra.gmra.mrb[0].mxu0 %v283_v21  ;;  %486 = vmatmul.mubr.bf16.vlgmr.msra.gmra.mrb[0].mxu1 %v449_v22 }
  0x29   : > { %556 = vmatpush1.bf16.msra.mxu0 %v1314_v1  ;;  %658 = vmatpush1.bf16.msra.mxu1 %v1314_v1 }
  0x2a   : > { %557 = vmatprep.subr.bf16.mxu0 %v1321_v3  ;;  %659 = vmatprep.subr.bf16.mxu1 %v1321_v3 }
  0x2b   : > { %409 = vmatprep.mubr.bf16.mxu0 %v1262_v2  ;;  %495 = vmatprep.mubr.bf16.mxu1 %v1262_v2 }
  0x2d   : > { %558 = vmatpush1.bf16.msra.mxu0 %v1328_v4  ;;  %660 = vmatpush1.bf16.msra.mxu1 %v1328_v4 }
  0x2e   : > { %559 = vmatprep.subr.bf16.mxu0 %v1335_v5  ;;  %661 = vmatprep.subr.bf16.mxu1 %v1335_v5 }
  0x30   : > { %410 = vmatmul.mubr.bf16.gmra.mrb[4].mxu0 %v284_v27  ;;  %496 = vmatmul.mubr.bf16.gmra.mrb[4].mxu1 %v450_v28 }
  0x31   : > { %560 = vmatpush1.bf16.msra.mxu0 %v1342_v6  ;;  %662 = vmatpush1.bf16.msra.mxu1 %v1342_v6 }
  0x32   : > { %561 = vmatprep.subr.bf16.mxu0 %v1349_v7  ;;  %663 = vmatprep.subr.bf16.mxu1 %v1349_v7 }
  0x33   : > { %419 = vmatprep.mubr.bf16.mxu0 %v1262_v2  ;;  %505 = vmatprep.mubr.bf16.mxu1 %v1262_v2 }
  0x35   : > { %562 = vmatpush1.bf16.msra.mxu0 %v1356_v8  ;;  %664 = vmatpush1.bf16.msra.mxu1 %v1356_v8 }
  0x36   : > { %563 = vmatprep.subr.bf16.mxu0 %v1363_v9  ;;  %665 = vmatprep.subr.bf16.mxu1 %v1363_v9 }
  0x38   : > { %420 = vmatmul.mubr.bf16.gmra.mrb[8].mxu0 %v285_v33  ;;  %506 = vmatmul.mubr.bf16.gmra.mrb[8].mxu1 %v451_v34 }
  0x39   : > { %564 = vmatpush1.bf16.msra.mxu0 %v1371_v10  ;;  %666 = vmatpush1.bf16.msra.mxu1 %v1371_v10 }
  0x3a   : > { %565 = vmatprep.subr.bf16.mxu0 %v1378_v11  ;;  %667 = vmatprep.subr.bf16.mxu1 %v1378_v11 }
  0x3b   : > { %429 = vmatprep.mubr.bf16.mxu0 %v1262_v2  ;;  %515 = vmatprep.mubr.bf16.mxu1 %v1262_v2 }
  0x3d   : > { %566 = vmatpush1.bf16.msra.mxu0 %v1388_v12  ;;  %668 = vmatpush1.bf16.msra.mxu1 %v1388_v12 }
  0x3e   : > { %567 = vmatprep.subr.bf16.mxu0 %v1395_v13  ;;  %669 = vmatprep.subr.bf16.mxu1 %v1395_v13 }
  0x40   : > { %430 = vmatmul.mubr.bf16.gmra.mrb[12].mxu0 %v286_v39  ;;  %516 = vmatmul.mubr.bf16.gmra.mrb[12].mxu1 %v452_v40 }
  0x41   : > { %568 = vmatpush1.bf16.msra.mxu0 %v1403_v14  ;;  %670 = vmatpush1.bf16.msra.mxu1 %v1403_v14 }
  0x42   : > { %569 = vmatprep.subr.bf16.mxu0 %v1415_v15  ;;  %671 = vmatprep.subr.bf16.mxu1 %v1415_v15 }
  0x43   : > { %587 = vmatprep.mubr.bf16.mxu0 %v1262_v2  ;;  %689 = vmatprep.mubr.bf16.mxu1 %v1262_v2 }
  0x45   : > { %570 = vmatpush1.bf16.msra.mxu0 %v1420_v16  ;;  %672 = vmatpush1.bf16.msra.mxu1 %v1420_v16 }
  0x48   : > { %588 = vmatmul.mubr.bf16.vlgmr.msra.gmra.mrb[16].mxu0 %v551_v45  ;;  %690 = vmatmul.mubr.bf16.vlgmr.msra.gmra.mrb[16].mxu1 %v653_v46 }
  0x49   : > { %597 = vmatprep.mubr.bf16.mxu0 %v1262_v2  ;;  %699 = vmatprep.mubr.bf16.mxu1 %v1262_v2 }
  0x50   : > { %598 = vmatmul.mubr.bf16.gmra.mrb[20].mxu0 %v552_v51  ;;  %700 = vmatmul.mubr.bf16.gmra.mrb[20].mxu1 %v654_v52  ;;  %v750_v51 = vsub.s32 0, %v749_v43  ;;  %v746_v52 = vld [vmem:[%s1694_s2] sm:$0x3] }
  0x51   : > { %607 = vmatprep.mubr.bf16.mxu0 %v1262_v2  ;;  %709 = vmatprep.mubr.bf16.mxu1 %v1262_v2 }
  0x52   : > { %v1579_v59 = vrot.slane %v746_v52, %v750_v51 }
  0x58   : > { %608 = vmatmul.mubr.bf16.gmra.mrb[24].mxu0 %v553_v57  ;;  %710 = vmatmul.mubr.bf16.gmra.mrb[24].mxu1 %v655_v58 }
  0x59   : > { %617 = vmatprep.mubr.bf16.mxu0 %v1262_v2  ;;  %719 = vmatprep.mubr.bf16.mxu1 %v1262_v2 }
  0x60   : > { %618 = vmatmul.mubr.bf16.gmra.mrb[28].mxu0 %v554_v63  ;;  %720 = vmatmul.mubr.bf16.gmra.mrb[28].mxu1 %v656_v0 }
  0xfb   : > { %v401_v1 = vpop.f32.mrb[0].mxu0  ;;  %v487_v3 = vpop.f32.mrb[0].mxu1 }
  0xfc   : > { %v526_v4 = vmax.f32 %v401_v1, %v487_v3  ;;  %v403_v5 = vpop.f32.mrb[1].mxu0  ;;  %v489_v6 = vpop.f32.mrb[1].mxu1 }
  0xfd   : > { %v527_v7 = vmax.f32 %v403_v5, %v489_v6  ;;  %v405_v8 = vpop.f32.mrb[2].mxu0  ;;  %v491_v9 = vpop.f32.mrb[2].mxu1  ;;  %v1581_v6 = vrot.slane %v746_v52, %v754_v55 }
  0xfe   : > { %v528_v10 = vmax.f32 %v405_v8, %v491_v9  ;;  %v407_v11 = vpop.f32.mrb[3].mxu0  ;;  %v493_v12 = vpop.f32.mrb[3].mxu1 }
  0xff   : > { %v529_v13 = vmax.f32 %v407_v11, %v493_v12 }
 0x103   : > { %v1504_v2 = vpop.f32.mrb[4].mxu0  ;;  %v1506_v14 = vpop.f32.mrb[4].mxu1 }
 0x104   : > { %v530_v15 = vmax.f32 %v1504_v2, %v1506_v14  ;;  %v1510_v16 = vpop.f32.mrb[5].mxu0  ;;  %v1512_v17 = vpop.f32.mrb[5].mxu1 }
 0x105   : > { %v531_v18 = vmax.f32 %v1510_v16, %v1512_v17  ;;  %v1516_v19 = vpop.f32.mrb[6].mxu0  ;;  %v1518_v20 = vpop.f32.mrb[6].mxu1 }
 0x106   : > { %v532_v21 = vmax.f32 %v1516_v19, %v1518_v20  ;;  %v1522_v22 = vpop.f32.mrb[7].mxu0  ;;  %v1524_v23 = vpop.f32.mrb[7].mxu1 }
 0x107   : > { %v533_v24 = vmax.f32 %v1522_v22, %v1524_v23 }
 0x10b   : > { %v1528_v25 = vpop.f32.mrb[8].mxu0  ;;  %v1530_v26 = vpop.f32.mrb[8].mxu1 }
 0x10c   : > { %v534_v27 = vmax.f32 %v1528_v25, %v1530_v26  ;;  %v1534_v28 = vpop.f32.mrb[9].mxu0  ;;  %v1536_v29 = vpop.f32.mrb[9].mxu1 }
 0x10d   : > { %v535_v30 = vmax.f32 %v1534_v28, %v1536_v29  ;;  %v1540_v31 = vpop.f32.mrb[10].mxu0  ;;  %v1542_v32 = vpop.f32.mrb[10].mxu1 }
 0x10e   : > { %v536_v33 = vmax.f32 %v1540_v31, %v1542_v32  ;;  %v1546_v34 = vpop.f32.mrb[11].mxu0  ;;  %v1548_v35 = vpop.f32.mrb[11].mxu1 }
 0x10f   : > { %v537_v36 = vmax.f32 %v1546_v34, %v1548_v35 }
 0x113   : > { %v1552_v38 = vpop.f32.mrb[12].mxu0  ;;  %v1554_v39 = vpop.f32.mrb[12].mxu1 }
 0x114   : > { %v538_v40 = vmax.f32 %v1552_v38, %v1554_v39  ;;  %v1558_v41 = vpop.f32.mrb[13].mxu0  ;;  %v1560_v42 = vpop.f32.mrb[13].mxu1 }
 0x115   : > { %v539_v44 = vmax.f32 %v1558_v41, %v1560_v42  ;;  %v1564_v45 = vpop.f32.mrb[14].mxu0  ;;  %v1566_v46 = vpop.f32.mrb[14].mxu1 }
 0x116   : > { %v540_v47 = vmax.f32 %v1564_v45, %v1566_v46  ;;  %v1570_v48 = vpop.f32.mrb[15].mxu0  ;;  %v1572_v49 = vpop.f32.mrb[15].mxu1 }
 0x117   : > { %v541_v50 = vmax.f32 %v1570_v48, %v1572_v49 }
 0x11b   : > { %v589_v53 = vpop.f32.mrb[16].mxu0  ;;  %v691_v54 = vpop.f32.mrb[16].mxu1 }
 0x11c   : > { %v628_v56 = vmax.f32 %v526_v4, %v589_v53  ;;  %v591_v57 = vpop.f32.mrb[17].mxu0  ;;  %v693_v58 = vpop.f32.mrb[17].mxu1 }
 0x11d   : > { %v629_v60 = vmax.f32 %v527_v7, %v591_v57  ;;  %v593_v61 = vpop.f32.mrb[18].mxu0  ;;  %v695_v62 = vpop.f32.mrb[18].mxu1 }
 0x11e   : > { %v730_v63 = vmax.f32 %v628_v56, %v691_v54  ;;  %v630_v0 = vmax.f32 %v528_v10, %v593_v61  ;;  %v595_v1 = vpop.f32.mrb[19].mxu0  ;;  %v697_v3 = vpop.f32.mrb[19].mxu1 }
 0x11f   : > { %v731_v5 = vmax.f32 %v629_v60, %v693_v58  ;;  %v631_v8 = vmax.f32 %v529_v13, %v595_v1 }
 0x120   : > { %v732_v9 = vmax.f32 %v630_v0, %v695_v62  ;;  %v758_v11 = vadd.f32 %v1579_v59, %v730_v63 }
 0x121   : > { %v733_v4 = vmax.f32 %v631_v8, %v697_v3  ;;  %v759_v12 = vadd.f32 %v1581_v6, %v731_v5 }
 0x122   : > { %774 = vxpose.xlu0.b32.start [1/8] (short) %v758_v11, 128  ;;  %v760_v52 = vadd.f32 %v1579_v59, %v732_v9 }
 0x123   : > { %v761_v7 = vadd.f32 %v1581_v6, %v733_v4  ;;  %v599_v37 = vpop.f32.mrb[20].mxu0  ;;  %v701_v43 = vpop.f32.mrb[20].mxu1 }
 0x124   : > { %v632_v10 = vmax.f32 %v530_v15, %v599_v37  ;;  %v601_v13 = vpop.f32.mrb[21].mxu0  ;;  %v703_v51 = vpop.f32.mrb[21].mxu1 }
 0x125   : > { %v1168_v53 = vpack.c.bf16 %v761_v7, %v759_v12  ;;  %v633_v54 = vmax.f32 %v531_v18, %v601_v13  ;;  %v603_v55 = vpop.f32.mrb[22].mxu0  ;;  %v705_v56 = vpop.f32.mrb[22].mxu1 }
 0x126   : > { %v734_v57 = vmax.f32 %v632_v10, %v701_v43  ;;  %v634_v58 = vmax.f32 %v532_v21, %v603_v55  ;;  %v707_v60 = vpop.f32.mrb[23].mxu1  ;;  %775 = vxpose.xlu0.b32.cont [2/8] (short) %v760_v52, 128  ;;  %v605_v2 = vpop.f32.mrb[23].mxu0 }
 0x127   : > { %1169 = vst [vmem:[%s1590_s12] sm:$0xff] %v1168_v53   ;;  %v735_v14 = vmax.f32 %v633_v54, %v703_v51  ;;  %v635_v15 = vmax.f32 %v533_v24, %v605_v2 }
 0x128   : > { %v736_v61 = vmax.f32 %v634_v58, %v705_v56  ;;  %v762_v16 = vadd.f32 %v1579_v59, %v734_v57 }
 0x129   : > { %v737_v17 = vmax.f32 %v635_v15, %v707_v60  ;;  %v763_v18 = vadd.f32 %v1581_v6, %v735_v14 }
 0x12a   : > { %776 = vxpose.xlu0.b32.cont [3/8] (short) %v762_v16, 128  ;;  %v764_v22 = vadd.f32 %v1579_v59, %v736_v61 }
 0x12b   : > { %v765_v62 = vadd.f32 %v1581_v6, %v737_v17  ;;  %v609_v19 = vpop.f32.mrb[24].mxu0  ;;  %v711_v20 = vpop.f32.mrb[24].mxu1 }
 0x12c   : > { %v636_v21 = vmax.f32 %v534_v27, %v609_v19  ;;  %v611_v63 = vpop.f32.mrb[25].mxu0  ;;  %v713_v0 = vpop.f32.mrb[25].mxu1 }
 0x12d   : > { %v1173_v23 = vpack.c.bf16 %v765_v62, %v763_v18  ;;  %v637_v24 = vmax.f32 %v535_v30, %v611_v63  ;;  %v613_v1 = vpop.f32.mrb[26].mxu0  ;;  %v715_v3 = vpop.f32.mrb[26].mxu1 }
 0x12e   : > { %v738_v5 = vmax.f32 %v636_v21, %v711_v20  ;;  %v638_v8 = vmax.f32 %v536_v33, %v613_v1  ;;  %v717_v9 = vpop.f32.mrb[27].mxu1  ;;  %777 = vxpose.xlu0.b32.cont [4/8] (short) %v764_v22, 128  ;;  %v615_v25 = vpop.f32.mrb[27].mxu0 }
 0x12f   : > { %1185 = vst [vmem:[%s1590_s12 + $0x8] sm:$0xff] %v1173_v23   ;;  %v739_v26 = vmax.f32 %v637_v24, %v713_v0  ;;  %v639_v27 = vmax.f32 %v537_v36, %v615_v25 }
 0x130   : > { %v740_v11 = vmax.f32 %v638_v8, %v715_v3  ;;  %v766_v28 = vadd.f32 %v1579_v59, %v738_v5 }
 0x131   : > { %v741_v29 = vmax.f32 %v639_v27, %v717_v9  ;;  %v767_v30 = vadd.f32 %v1581_v6, %v739_v26 }
 0x132   : > { %778 = vxpose.xlu0.b32.cont [5/8] (short) %v766_v28, 128  ;;  %v768_v34 = vadd.f32 %v1579_v59, %v740_v11 }
 0x133   : > { %v769_v4 = vadd.f32 %v1581_v6, %v741_v29  ;;  %v619_v31 = vpop.f32.mrb[28].mxu0  ;;  %v721_v32 = vpop.f32.mrb[28].mxu1 }
 0x134   : > { %v640_v33 = vmax.f32 %v538_v40, %v619_v31  ;;  %v621_v12 = vpop.f32.mrb[29].mxu0  ;;  %v723_v7 = vpop.f32.mrb[29].mxu1 }
 0x135   : > { %v1178_v35 = vpack.c.bf16 %v769_v4, %v767_v30  ;;  %v641_v36 = vmax.f32 %v539_v44, %v621_v12  ;;  %v623_v37 = vpop.f32.mrb[30].mxu0  ;;  %v725_v43 = vpop.f32.mrb[30].mxu1 }
 0x136   : > { %v742_v10 = vmax.f32 %v640_v33, %v721_v32  ;;  %v642_v13 = vmax.f32 %v540_v47, %v623_v37  ;;  %v727_v51 = vpop.f32.mrb[31].mxu1  ;;  %779 = vxpose.xlu0.b32.cont [6/8] (short) %v768_v34, 128  ;;  %v625_v38 = vpop.f32.mrb[31].mxu0 }
 0x137   : > { %1186 = vst [vmem:[%s1590_s12 + $0x10] sm:$0xff] %v1178_v35   ;;  %v743_v39 = vmax.f32 %v641_v36, %v723_v7  ;;  %v643_v40 = vmax.f32 %v541_v50, %v625_v38 }
 0x138   : > { %v744_v41 = vmax.f32 %v642_v13, %v725_v43  ;;  %v770_v42 = vadd.f32 %v1579_v59, %v742_v10 }
 0x139   : > { %v745_v44 = vmax.f32 %v643_v40, %v727_v51  ;;  %v771_v52 = vadd.f32 %v1581_v6, %v743_v39 }
 0x13a   : > { %780 = vxpose.xlu0.b32.cont [7/8] (short) %v770_v42, 128  ;;  %v772_v46 = vadd.f32 %v1579_v59, %v744_v41 }
 0x13b   : > { %v773_v45 = vadd.f32 %v1581_v6, %v745_v44 }
 0x13d   : > { %v1183_v47 = vpack.c.bf16 %v773_v45, %v771_v52 }
 0x13e   : > { %781 = vxpose.xlu0.b32.end [8/8] (short) %v772_v46, 128 }
 0x13f   : > { %1187 = vst [vmem:[%s1590_s12 + $0x18] sm:$0xff] %v1183_v47  }
 0x1a2   : > { %v790_v48 = vpop.trf.xlu0 }
 0x1a3   : > { %v1141_v49 = vpack.c.bf16 %v790_v48, %v790_v48 }
 0x1a5   : > { %871 = vst.msk [vmem:[%s1649_s20] sm:$0xf] %vm870_vm0, %v1141_v49 }
 0x1a6   : > { %v791_v50 = vpop.trf.xlu0 }
 0x1a7   : > { %v1142_v59 = vpack.c.bf16 %v791_v50, %v791_v50 }
 0x1a9   : > { %872 = vst.msk [vmem:[%s1649_s20 + $0x4] sm:$0xf] %vm870_vm0, %v1142_v59 }
 0x1aa   : > { %v792_v6 = vpop.trf.xlu0 }
 0x1ab   : > { %v1143_v53 = vpack.c.bf16 %v792_v6, %v792_v6 }
 0x1ad   : > { %873 = vst.msk [vmem:[%s1649_s20 + $0x8] sm:$0xf] %vm870_vm0, %v1143_v53 }
 0x1ae   : > { %v793_v54 = vpop.trf.xlu0 }
 0x1af   : > { %v1144_v55 = vpack.c.bf16 %v793_v54, %v793_v54 }
 0x1b1   : > { %874 = vst.msk [vmem:[%s1649_s20 + $0xc] sm:$0xf] %vm870_vm0, %v1144_v55 }
 0x1b2   : > { %v794_v56 = vpop.trf.xlu0 }
 0x1b3   : > { %v1145_v57 = vpack.c.bf16 %v794_v56, %v794_v56 }
 0x1b5   : > { %875 = vst.msk [vmem:[%s1649_s20 + $0x10] sm:$0xf] %vm870_vm0, %v1145_v57 }
 0x1b6   : > { %v795_v58 = vpop.trf.xlu0 }
 0x1b7   : > { %v1146_v60 = vpack.c.bf16 %v795_v58, %v795_v58 }
 0x1b9   : > { %876 = vst.msk [vmem:[%s1649_s20 + $0x14] sm:$0xf] %vm870_vm0, %v1146_v60 }
 0x1ba   : > { %v796_v2 = vpop.trf.xlu0 }
 0x1bb   : > { %v1147_v14 = vpack.c.bf16 %v796_v2, %v796_v2 }
 0x1bd   : > { %877 = vst.msk [vmem:[%s1649_s20 + $0x18] sm:$0xf] %vm870_vm0, %v1147_v14 }
 0x1be   : > { %v797_v15 = vpop.trf.xlu0 }
 0x1bf   : > { %v1148_v61 = vpack.c.bf16 %v797_v15, %v797_v15 }
 0x1c1   : > { %878 = vst.msk [vmem:[%s1649_s20 + $0x1c] sm:$0xf] %vm870_vm0, %v1148_v61 }
 0x1c2   : > { %v798_v16 = vpop.trf.xlu0 }
 0x1c3   : > { %v1149_v17 = vpack.c.bf16 %v798_v16, %v798_v16 }
 0x1c5   : > { %879 = vst.msk [vmem:[%s1649_s20 + $0x20] sm:$0xf] %vm870_vm0, %v1149_v17 }
 0x1c6   : > { %v799_v18 = vpop.trf.xlu0 }
 0x1c7   : > { %v1150_v62 = vpack.c.bf16 %v799_v18, %v799_v18 }
 0x1c9   : > { %880 = vst.msk [vmem:[%s1649_s20 + $0x24] sm:$0xf] %vm870_vm0, %v1150_v62 }
 0x1ca   : > { %v800_v19 = vpop.trf.xlu0 }
 0x1cb   : > { %v1151_v20 = vpack.c.bf16 %v800_v19, %v800_v19 }
 0x1cd   : > { %881 = vst.msk [vmem:[%s1649_s20 + $0x28] sm:$0xf] %vm870_vm0, %v1151_v20 }
 0x1ce   : > { %v801_v21 = vpop.trf.xlu0 }
 0x1cf   : > { %v1152_v63 = vpack.c.bf16 %v801_v21, %v801_v21 }
 0x1d1   : > { %882 = vst.msk [vmem:[%s1649_s20 + $0x2c] sm:$0xf] %vm870_vm0, %v1152_v63 }
 0x1d2   : > { %v802_v0 = vpop.trf.xlu0 }
 0x1d3   : > { %v1153_v22 = vpack.c.bf16 %v802_v0, %v802_v0 }
 0x1d5   : > { %883 = vst.msk [vmem:[%s1649_s20 + $0x30] sm:$0xf] %vm870_vm0, %v1153_v22 }
 0x1d6   : > { %v803_v23 = vpop.trf.xlu0 }
 0x1d7   : > { %v1154_v24 = vpack.c.bf16 %v803_v23, %v803_v23 }
 0x1d9   : > { %884 = vst.msk [vmem:[%s1649_s20 + $0x34] sm:$0xf] %vm870_vm0, %v1154_v24 }
 0x1da   : > { %v804_v1 = vpop.trf.xlu0 }
 0x1db   : > { %v1155_v3 = vpack.c.bf16 %v804_v1, %v804_v1 }
 0x1dd   : > { %885 = vst.msk [vmem:[%s1649_s20 + $0x38] sm:$0xf] %vm870_vm0, %v1155_v3 }
 0x1de   : > { %v805_v5 = vpop.trf.xlu0 }
 0x1df   : > { %v1156_v8 = vpack.c.bf16 %v805_v5, %v805_v5 }
 0x1e1   : > { %886 = vst.msk [vmem:[%s1649_s20 + $0x3c] sm:$0xf] %vm870_vm0, %v1156_v8 }
 0x1e2 PF: > { %s15_s17 = sadd.s32 1, %s1260_s17   ;;  %s1697_s15 = smov %s1256_s16 }
 0x1e3   : > { %p12_p5 = scmp.ge.s32.totalorder %s15_s17, 4   ;;  %s1698_s16 = smov %s1700_s18 }
 0x1e5   :  { %14 = sbr.rel (!%p12_p5) target bundleno = 2 (0x2), region = 77 }

// kernel: nonlocal_block_pallas.3
= control target key start
LH: loop header
LB: loop body
LE: loop exit
PB: predicated region body
PF: predicated region fallthrough
CT: control target
= control target key end

     0   :  { %s1829_s24 = smov 0   ;;  %s1831_s25 = smov 0   ;;  %s2151_s0 = inlined_call_operand.vmem [shape: f32[2,256,128], index: 0, kind: input, shape index: {}, may-alias: {0,7}]   ;;  %s2152_s1 = inlined_call_operand.vmem [shape: bf16[2,128,64], index: 1, kind: input, shape index: {}]   ;;  %s2153_s2 = inlined_call_operand.vmem [shape: bf16[2,64,128], index: 2, kind: input, shape index: {}]   ;;  %s2154_s3 = inlined_call_operand.vmem [shape: bf16[128,128], index: 3, kind: input, shape index: {}]   ;;  %s2155_s4 = inlined_call_operand.vmem [shape: f32[1,128], index: 4, kind: input, shape index: {}]   ;;  %s2156_s5 = inlined_call_operand.vmem [shape: bf16[128,128], index: 5, kind: input, shape index: {}]   ;;  %s2157_s6 = inlined_call_operand.vmem [shape: f32[1,128], index: 6, kind: input, shape index: {}]   ;;  %s2158_s7 = inlined_call_operand.vmem [shape: f32[2,256,128], index: 7, kind: output, shape index: {}, may-alias: {0,7}]  }
   0x1   :  { %s1833_s26 = smov 0   ;;  %s1835_s27 = smov 0  }
   0x2   :  { %s1837_s28 = smov 0  }
   0x3 LB: > { %s26_s29 = sadd.s32 1, %s1779_s26  ;;  %s29_s30 = sadd.s32 1, %s1783_s27  ;;  %s1787_s28 = sphi %s1837_s28, %s17_s28   ;;  %s1783_s27 = sphi %s1835_s27, %s2162_s27   ;;  %s1779_s26 = sphi %s1833_s26, %s2161_s26   ;;  %s1775_s25 = sphi %s1831_s25, %s2160_s25   ;;  %s1771_s24 = sphi %s1829_s24, %s2159_s24  }
   0x4   : > { %p27_p0 = scmp.ge.s32.totalorder %s26_s29, 2  ;;  %p1384_p1 = scmp.ge.s32.totalorder %s1787_s28, 1 }
   0x5   : > { %p278_p2 = scmp.lt.s32.totalorder %s1787_s28, 5 }
   0x6   : > { %s2164_s29 = smov (%p27_p0, %s26_s29), 0  ;;  %s2166_s30 = smov (!%p27_p0, %s29_s30), %s1783_s27 }
   0x7   : > { %p279_p3 = pnand %p1384_p1, %p278_p2  ;;  %p31_p4 = scmp.ge.s32.totalorder %s2166_s30, 2 }
   0x8   : > { %v1657_v0 = vld [vmem:[%s2154_s3] sm:$0xff] (!%p279_p3)   ;;  %s1385_s10 = sshll.u32 (!%p279_p3), %s1771_s24, 4  ;;  %v1658_v1 = vld [vmem:[%s2154_s3 + $0x8] sm:$0xff] (!%p279_p3)   ;;  %p329_p5 = scmp.lt.s32.totalorder (!%p279_p3), %s1775_s25, 1  ;;  %v1659_v2 = vld [vmem:[%s2154_s3 + $0x10] sm:$0xff] (!%p279_p3)   ;;  %vm720_vm0 = vcmask (!%p279_p3), 523264  }
   0x9   : > { %s2168_s30 = smov (%p31_p4, %s2166_s30), 0  ;;  %282 = sbr.rel (%p279_p3) target bundleno = 1105 (0x451), region = 48 }
   0xa   : > { %1497 = vmatprep.subr.bf16.mxu0 (!%p279_p3), %v1657_v0  ;;  %p331_p6 = scmp.lt.s32.totalorder (!%p279_p3), %s1385_s10, 31  ;;  %v1660_v3 = vld [vmem:[%s2154_s3 + $0x18] sm:$0xff] (!%p279_p3)   ;;  %v1661_v8 = vld [vmem:[%s2154_s3 + $0x20] sm:$0xff] (!%p279_p3)   ;;  %v1662_v9 = vld [vmem:[%s2154_s3 + $0x28] sm:$0xff] (!%p279_p3)  }
   0xb   : > { %1498 = vmatpush3.bf16.msra.mxu0 (!%p279_p3), %v1657_v0  ;;  %v1663_v12 = vld [vmem:[%s2154_s3 + $0x30] sm:$0xff] (!%p279_p3)   ;;  %v1664_v15 = vld [vmem:[%s2154_s3 + $0x38] sm:$0xff] (!%p279_p3)   ;;  %v1395_v41 = vld [vmem:[%s2155_s4] ss:$0 sm:$0xff] (!%p279_p3) }
   0xc   : > { %1499 = vmatprep.subr.bf16.mxu0 (!%p279_p3), %v1658_v1 }
   0xf   : > { %1500 = vmatpush3.bf16.msra.mxu0 (!%p279_p3), %v1658_v1 }
  0x10   : > { %s2170_s25 = smov (!%p329_p5, %s1775_s25), 1  ;;  %s2172_s10 = smov (!%p331_p6, %s1385_s10), 31  ;;  %1501 = vmatprep.subr.bf16.mxu0 %v1659_v2 }
  0x11   : > { %s1386_s15 = sshll.u32 %s2170_s25, 5  ;;  %s1435_s17 = sshll.u32 %s2170_s25, 6 }
  0x12   : > { %s1873_s16 = sadd.s32 %s1386_s15, %s2172_s10  ;;  %s1883_s23 = scalar_lea.vmem %s2152_s1, %s1435_s17 }
  0x13   : > { %s1387_s20 = sshll.u32 %s1873_s16, 3  ;;  %v1665_v4 = vld [vmem:[%s1883_s23] sm:$0xff]   ;;  %1502 = vmatpush3.bf16.msra.mxu0 %v1659_v2  ;;  %v1666_v10 = vld [vmem:[%s1883_s23 + $0x8] sm:$0xff]   ;;  %v1667_v11 = vld [vmem:[%s1883_s23 + $0x10] sm:$0xff]   ;;  %s1984_s8 = scalar_lea.vmem %s2153_s2, %s1386_s15 }
  0x14   : > { %s1890_s9 = scalar_lea.vmem %s2151_s0, %s1387_s20  ;;  %1529 = vmatprep.subr.bf16.mxu1 %v1665_v4  ;;  %1503 = vmatprep.subr.bf16.mxu0 %v1660_v3  ;;  %v1668_v13 = vld [vmem:[%s1883_s23 + $0x18] sm:$0xff]   ;;  %v1669_v14 = vld [vmem:[%s1883_s23 + $0x20] sm:$0xff]   ;;  %v1670_v18 = vld [vmem:[%s1883_s23 + $0x28] sm:$0xff]   ;;  %s2102_s11 = scalar_lea.vmem %s2158_s7, %s1387_s20 }
  0x15   : > { %v1894_v5 = vld [vmem:[%s1890_s9] sm:$0xff]  ;;  %v1897_v6 = vld [vmem:[%s1890_s9 + $0x8] sm:$0xff]  ;;  %1530 = vmatpush3.bf16.msra.mxu1 %v1665_v4  ;;  %v1918_v16 = vld [vmem:[%s1890_s9 + $0x10] sm:$0xff] }
  0x16   : > { %v375_v7 = vpack.c.bf16 %v1897_v6, %v1894_v5  ;;  %1531 = vmatprep.subr.bf16.mxu1 %v1666_v10  ;;  %v1921_v17 = vld [vmem:[%s1890_s9 + $0x18] sm:$0xff]  ;;  %v1925_v19 = vld [vmem:[%s1890_s9 + $0x20] sm:$0xff]  ;;  %v1928_v20 = vld [vmem:[%s1890_s9 + $0x28] sm:$0xff] }
  0x17   : > { %1504 = vmatpush3.bf16.msra.mxu0 %v1660_v3  ;;  %v376_v21 = vpack.c.bf16 %v1921_v17, %v1918_v16  ;;  %v377_v22 = vpack.c.bf16 %v1928_v20, %v1925_v19  ;;  %v1935_v23 = vld [vmem:[%s1890_s9 + $0x30] sm:$0xff]  ;;  %v1938_v24 = vld [vmem:[%s1890_s9 + $0x38] sm:$0xff]  ;;  %v1941_v25 = vld [vmem:[%s1890_s9 + $0x40] sm:$0xff] }
  0x18   : > { %1513 = vmatprep.mubr.bf16.mxu0 %v375_v7  ;;  %1505 = vmatprep.subr.bf16.mxu0 %v1661_v8  ;;  %v1944_v26 = vld [vmem:[%s1890_s9 + $0x48] sm:$0xff]  ;;  %v378_v27 = vpack.c.bf16 %v1938_v24, %v1935_v23  ;;  %v1951_v29 = vld [vmem:[%s1890_s9 + $0x50] sm:$0xff]  ;;  %v1954_v30 = vld [vmem:[%s1890_s9 + $0x58] sm:$0xff] }
  0x19   : > { %1532 = vmatpush3.bf16.msra.mxu1 %v1666_v10  ;;  %v379_v28 = vpack.c.bf16 %v1944_v26, %v1941_v25  ;;  %v1957_v31 = vld [vmem:[%s1890_s9 + $0x60] sm:$0xff]  ;;  %v1960_v32 = vld [vmem:[%s1890_s9 + $0x68] sm:$0xff]  ;;  %v380_v33 = vpack.c.bf16 %v1954_v30, %v1951_v29  ;;  %v1967_v35 = vld [vmem:[%s1890_s9 + $0x70] sm:$0xff] }
  0x1a   : > { %1533 = vmatprep.subr.bf16.mxu1 %v1667_v11  ;;  %v381_v34 = vpack.c.bf16 %v1960_v32, %v1957_v31  ;;  %v1970_v36 = vld [vmem:[%s1890_s9 + $0x78] sm:$0xff]  ;;  %v1671_v38 = vld [vmem:[%s1883_s23 + $0x30] sm:$0xff]  }
  0x1b   : > { %1506 = vmatpush3.bf16.msra.mxu0 %v1661_v8  ;;  %v382_v37 = vpack.c.bf16 %v1970_v36, %v1967_v35  ;;  %v1672_v39 = vld [vmem:[%s1883_s23 + $0x38] sm:$0xff]  }
  0x1c   : > { %1507 = vmatprep.subr.bf16.mxu0 %v1662_v9 }
  0x1d   : > { %1534 = vmatpush3.bf16.msra.mxu1 %v1667_v11 }
  0x1e   : > { %1535 = vmatprep.subr.bf16.mxu1 %v1668_v13 }
  0x1f   : > { %1508 = vmatpush3.bf16.msra.mxu0 %v1662_v9 }
  0x20   : > { %1509 = vmatprep.subr.bf16.mxu0 %v1663_v12 }
  0x21   : > { %1536 = vmatpush3.bf16.msra.mxu1 %v1668_v13 }
  0x22   : > { %1537 = vmatprep.subr.bf16.mxu1 %v1669_v14 }
  0x23   : > { %1510 = vmatpush3.bf16.msra.mxu0 %v1663_v12 }
  0x24   : > { %1511 = vmatprep.subr.bf16.mxu0 %v1664_v15 }
  0x25   : > { %1538 = vmatpush3.bf16.msra.mxu1 %v1669_v14 }
  0x26   : > { %1539 = vmatprep.subr.bf16.mxu1 %v1670_v18 }
  0x27   : > { %1512 = vmatpush3.bf16.msra.mxu0 %v1664_v15 }
  0x29   : > { %1540 = vmatpush3.bf16.msra.mxu1 %v1670_v18 }
  0x2a   : > { %1514 = vmatmul.mubr.bf16.vlgmr.msra.gmra.mrb[0].mxu0 %v376_v21  ;;  %1541 = vmatprep.subr.bf16.mxu1 %v1671_v38 }
  0x2b   : > { %1517 = vmatprep.mubr.bf16.mxu0 %v377_v22 }
  0x2d   : > { %1542 = vmatpush3.bf16.msra.mxu1 %v1671_v38 }
  0x2e   : > { %1543 = vmatprep.subr.bf16.mxu1 %v1672_v39 }
  0x31   : > { %1544 = vmatpush3.bf16.msra.mxu1 %v1672_v39 }
  0x32   : > { %1518 = vmatmul.mubr.bf16.gmra.mrb[4].mxu0 %v378_v27  ;;  %v1673_v27 = vld [vmem:[%s1984_s8] sm:$0xff]  }
  0x33   : > { %1521 = vmatprep.mubr.bf16.mxu0 %v379_v28  ;;  %v1674_v28 = vld [vmem:[%s1984_s8 + $0x8] sm:$0xff]   ;;  %1561 = vmatprep.subr.bf16.mxu0 %v1673_v27 }
  0x34   : > { %1562 = vmatpush3.bf16.msra.mxu0 %v1673_v27 }
  0x35   : > { %1563 = vmatprep.subr.bf16.mxu0 %v1674_v28 }
  0x38   : > { %1564 = vmatpush3.bf16.msra.mxu0 %v1674_v28 }
  0x3a   : > { %1522 = vmatmul.mubr.bf16.gmra.mrb[8].mxu0 %v380_v33 }
  0x3b   : > { %1525 = vmatprep.mubr.bf16.mxu0 %v381_v34 }
  0x42   : > { %1526 = vmatmul.mubr.bf16.gmra.mrb[12].mxu0 %v382_v37 }
  0xfd   : > { %v1515_v40 = vpop.f32.mrb[0].mxu0 }
  0xfe   : > { %v488_v42 = vpop.f32.mrb[1].mxu0  ;;  %v497_v44 = vadd.f32 %v1515_v40, %v1395_v41 }
  0xff   : > { %v1516_v43 = vpop.f32.mrb[2].mxu0  ;;  %v489_v47 = vadd.f32 %v1395_v41, %v488_v42 }
 0x100   : > { %v500_v45 = vadd.f32 %v1516_v43, %v1395_v41  ;;  %v491_v46 = vpop.f32.mrb[3].mxu0 }
 0x101   : > { %v492_v48 = vadd.f32 %v1395_v41, %v491_v46 }
 0x102   : > { %v552_v49 = vpack.c.bf16 %v500_v45, %v497_v44 }
 0x103   : > { %v551_v50 = vpack.c.bf16 %v492_v48, %v489_v47 }
 0x105   : > { %v1519_v51 = vpop.f32.mrb[4].mxu0  ;;  %1545 = vmatprep.mubr.bf16.mxu1 %v551_v50 }
 0x106   : > { %v504_v52 = vpop.f32.mrb[5].mxu0  ;;  %1546 = vmatmul.mubr.bf16.vlgmr.msra.gmra.mrb[0].mxu1 %v552_v49  ;;  %v513_v54 = vadd.f32 %v1519_v51, %v1395_v41 }
 0x107   : > { %v1520_v53 = vpop.f32.mrb[6].mxu0  ;;  %v505_v57 = vadd.f32 %v1395_v41, %v504_v52 }
 0x108   : > { %v516_v55 = vadd.f32 %v1520_v53, %v1395_v41  ;;  %v507_v56 = vpop.f32.mrb[7].mxu0 }
 0x109   : > { %v508_v58 = vadd.f32 %v1395_v41, %v507_v56 }
 0x10a   : > { %v554_v59 = vpack.c.bf16 %v516_v55, %v513_v54 }
 0x10b   : > { %v553_v60 = vpack.c.bf16 %v508_v58, %v505_v57 }
 0x10d   : > { %v1523_v61 = vpop.f32.mrb[8].mxu0  ;;  %1549 = vmatprep.mubr.bf16.mxu1 %v553_v60 }
 0x10e   : > { %v520_v62 = vpop.f32.mrb[9].mxu0  ;;  %1550 = vmatmul.mubr.bf16.gmra.mrb[4].mxu1 %v554_v59  ;;  %v529_v0 = vadd.f32 %v1523_v61, %v1395_v41 }
 0x10f   : > { %v1524_v63 = vpop.f32.mrb[10].mxu0  ;;  %v521_v3 = vadd.f32 %v1395_v41, %v520_v62 }
 0x110   : > { %v532_v1 = vadd.f32 %v1524_v63, %v1395_v41  ;;  %v523_v2 = vpop.f32.mrb[11].mxu0 }
 0x111   : > { %v524_v4 = vadd.f32 %v1395_v41, %v523_v2 }
 0x112   : > { %v556_v7 = vpack.c.bf16 %v532_v1, %v529_v0  ;;  %v1675_v1 = vld [vmem:[%s1984_s8 + $0x10] sm:$0xff]  }
 0x113   : > { %v555_v8 = vpack.c.bf16 %v524_v4, %v521_v3  ;;  %1565 = vmatprep.subr.bf16.mxu0 %v1675_v1  ;;  %v1676_v4 = vld [vmem:[%s1984_s8 + $0x18] sm:$0xff]  }
 0x114   : > { %1566 = vmatpush3.bf16.msra.mxu0 %v1675_v1 }
 0x115   : > { %v1527_v9 = vpop.f32.mrb[12].mxu0  ;;  %1553 = vmatprep.mubr.bf16.mxu1 %v555_v8  ;;  %1567 = vmatprep.subr.bf16.mxu0 %v1676_v4 }
 0x116   : > { %v536_v10 = vpop.f32.mrb[13].mxu0  ;;  %1554 = vmatmul.mubr.bf16.gmra.mrb[8].mxu1 %v556_v7  ;;  %v545_v12 = vadd.f32 %v1527_v9, %v1395_v41 }
 0x117   : > { %v1528_v11 = vpop.f32.mrb[14].mxu0  ;;  %v537_v15 = vadd.f32 %v1395_v41, %v536_v10 }
 0x118   : > { %v548_v13 = vadd.f32 %v1528_v11, %v1395_v41  ;;  %v539_v14 = vpop.f32.mrb[15].mxu0  ;;  %1568 = vmatpush3.bf16.msra.mxu0 %v1676_v4 }
 0x119   : > { %v540_v18 = vadd.f32 %v1395_v41, %v539_v14 }
 0x11a   : > { %v558_v21 = vpack.c.bf16 %v548_v13, %v545_v12 }
 0x11b   : > { %v557_v22 = vpack.c.bf16 %v540_v18, %v537_v15 }
 0x11d   : > { %1557 = vmatprep.mubr.bf16.mxu1 %v557_v22 }
 0x11e   : > { %1558 = vmatmul.mubr.bf16.gmra.mrb[12].mxu1 %v558_v21 }
 0x1d9   : > { %v1547_v33 = vpop.f32.mrb[0].mxu1 }
 0x1da   : > { %v657_v34 = vpop.f32.mrb[1].mxu1  ;;  %v727_v37 = vsel %vm720_vm0, %v1547_v33, -inf }
 0x1db   : > { %728 = vmax.xlane.f32.xlu1 %v727_v37  ;;  %v1548_v38 = vpop.f32.mrb[2].mxu1  ;;  %v721_v39 = vsel %vm720_vm0, %v657_v34, -inf }
 0x1dc   : > { %722 = vmax.xlane.f32.xlu0 %v721_v39  ;;  %v660_v40 = vpop.f32.mrb[3].mxu1  ;;  %v730_v41 = vsel %vm720_vm0, %v1548_v38, -inf }
 0x1dd   : > { %v724_v42 = vsel %vm720_vm0, %v660_v40, -inf }
 0x1df   : > { %731 = vmax.xlane.f32.xlu1 %v730_v41 }
 0x1e0   : > { %725 = vmax.xlane.f32.xlu0 %v724_v42 }
 0x1e1   : > { %v1992_v43 = vpop.f32.mrb[4].mxu1 }
 0x1e2   : > { %v673_v44 = vpop.f32.mrb[5].mxu1  ;;  %v739_v49 = vsel %vm720_vm0, %v1992_v43, -inf }
 0x1e3   : > { %v1994_v45 = vpop.f32.mrb[6].mxu1  ;;  %v733_v46 = vsel %vm720_vm0, %v673_v44, -inf }
 0x1e4   : > { %734 = vmax.xlane.f32.xlu0 %v733_v46  ;;  %v676_v47 = vpop.f32.mrb[7].mxu1  ;;  %v742_v51 = vsel %vm720_vm0, %v1994_v45, -inf }
 0x1e5   : > { %v736_v48 = vsel %vm720_vm0, %v676_v47, -inf }
 0x1e6   : > { %737 = vmax.xlane.f32.xlu1 %v736_v48 }
 0x1e8   : > { %740 = vmax.xlane.f32.xlu0 %v739_v49 }
 0x1e9   : > { %v2000_v50 = vpop.f32.mrb[8].mxu1 }
 0x1ea   : > { %743 = vmax.xlane.f32.xlu1 %v742_v51  ;;  %v2004_v52 = vpop.f32.mrb[9].mxu1  ;;  %v751_v57 = vsel %vm720_vm0, %v2000_v50, -inf }
 0x1eb   : > { %v2006_v53 = vpop.f32.mrb[10].mxu1  ;;  %v745_v54 = vsel %vm720_vm0, %v2004_v52, -inf }
 0x1ec   : > { %746 = vmax.xlane.f32.xlu0 %v745_v54  ;;  %v2010_v55 = vpop.f32.mrb[11].mxu1  ;;  %v754_v59 = vsel %vm720_vm0, %v2006_v53, -inf }
 0x1ed   : > { %v748_v56 = vsel %vm720_vm0, %v2010_v55, -inf }
 0x1ee   : > { %749 = vmax.xlane.f32.xlu1 %v748_v56 }
 0x1f0   : > { %752 = vmax.xlane.f32.xlu0 %v751_v57 }
 0x1f1   : > { %v2016_v58 = vpop.f32.mrb[12].mxu1 }
 0x1f2   : > { %755 = vmax.xlane.f32.xlu1 %v754_v59  ;;  %v2020_v60 = vpop.f32.mrb[13].mxu1  ;;  %v763_v2 = vsel %vm720_vm0, %v2016_v58, -inf }
 0x1f3   : > { %v2022_v61 = vpop.f32.mrb[14].mxu1  ;;  %v757_v62 = vsel %vm720_vm0, %v2020_v60, -inf }
 0x1f4   : > { %758 = vmax.xlane.f32.xlu0 %v757_v62  ;;  %v2026_v63 = vpop.f32.mrb[15].mxu1  ;;  %v766_v3 = vsel %vm720_vm0, %v2022_v61, -inf }
 0x1f5   : > { %v760_v0 = vsel %vm720_vm0, %v2026_v63, -inf }
 0x1f6   : > { %761 = vmax.xlane.f32.xlu1 %v760_v0 }
 0x1f8   : > { %764 = vmax.xlane.f32.xlu0 %v763_v2 }
 0x1fa   : > { %767 = vmax.xlane.f32.xlu1 %v766_v3 }
 0x268   : > { %v729_v7 = vpop.xlane.xlu1 %728 }
 0x269   : > { %v771_v8 = vsub.f32 %v1547_v33, %v729_v7  ;;  %v723_v9 = vpop.xlane.xlu0 %722 }
 0x26a   : > { %v769_v10 = vsub.f32 %v657_v34, %v723_v9 }
 0x26b   : > { %v789_v11 = vmul.f32 1.442695, %v771_v8 }
 0x26c   : > { %v785_v12 = vmul.f32 1.442695, %v769_v10  ;;  %v732_v13 = vpop.xlane.xlu1 %731 }
 0x26d   : > { %v772_v14 = vsub.f32 %v1548_v38, %v732_v13  ;;  %v726_v15 = vpop.xlane.xlu0 %725 }
 0x26e   : > { %1685 = vpow2.f32 %v785_v12  ;;  %v770_v18 = vsub.f32 %v660_v40, %v726_v15 }
 0x26f   : > { %v791_v21 = vmul.f32 1.442695, %v772_v14  ;;  %1687 = vpow2.f32 %v789_v11 }
 0x270   : > { %v787_v22 = vmul.f32 1.442695, %v770_v18 }
 0x271   : > { %1689 = vpow2.f32 %v791_v21  ;;  %v735_v27 = vpop.xlane.xlu0 %734 }
 0x272   : > { %1691 = vpow2.f32 %v787_v22  ;;  %v773_v28 = vsub.f32 %v673_v44, %v735_v27 }
 0x273   : > { %v738_v37 = vpop.xlane.xlu1 %737 }
 0x274   : > { %v793_v39 = vmul.f32 1.442695, %v773_v28  ;;  %v774_v41 = vsub.f32 %v676_v47, %v738_v37 }
 0x275   : > { %v741_v33 = vpop.xlane.xlu0 %740 }
 0x276   : > { %1693 = vpow2.f32 %v793_v39  ;;  %v795_v34 = vmul.f32 1.442695, %v774_v41  ;;  %v775_v42 = vsub.f32 %v1992_v43, %v741_v33 }
 0x277   : > { %v744_v46 = vpop.xlane.xlu1 %743 }
 0x278   : > { %v1686_v38 = vpop.eup %1685  ;;  %1695 = vpow2.f32 %v795_v34  ;;  %v797_v48 = vmul.f32 1.442695, %v775_v42  ;;  %v776_v40 = vsub.f32 %v1994_v45, %v744_v46 }
 0x279   : > { %v747_v49 = vpop.xlane.xlu0 %746  ;;  %v817_v51 = vsel %vm720_vm0, %v1686_v38, 0.0  ;;  %v1688_v54 = vpop.eup %1687 }
 0x27a   : > { %1697 = vpow2.f32 %v797_v48  ;;  %v799_v44 = vmul.f32 1.442695, %v776_v40  ;;  %v777_v56 = vsub.f32 %v2004_v52, %v747_v49  ;;  %818 = vadd.xlane.f32.xlu0 %v817_v51  ;;  %v823_v45 = vsel %vm720_vm0, %v1688_v54, 0.0 }
 0x27b   : > { %v1690_v47 = vpop.eup %1689  ;;  %v750_v57 = vpop.xlane.xlu1 %749 }
 0x27c   : > { %v1692_v59 = vpop.eup %1691  ;;  %v882_v62 = vpack.c.bf16 %v1690_v47, %v1688_v54  ;;  %1699 = vpow2.f32 %v799_v44  ;;  %v801_v43 = vmul.f32 1.442695, %v777_v56  ;;  %v778_v0 = vsub.f32 %v2010_v55, %v750_v57 }
 0x27d   : > { %v753_v1 = vpop.xlane.xlu0 %752  ;;  %v820_v2 = vsel %vm720_vm0, %v1692_v59, 0.0  ;;  %v881_v3 = vpack.c.bf16 %v1692_v59, %v1686_v38  ;;  %v826_v12 = vsel %vm720_vm0, %v1690_v47, 0.0 }
 0x27e   : > { %1701 = vpow2.f32 %v801_v43  ;;  %v803_v4 = vmul.f32 1.442695, %v778_v0  ;;  %v779_v7 = vsub.f32 %v2000_v50, %v753_v1  ;;  %824 = vadd.xlane.f32.xlu0 %v823_v45  ;;  %821 = vadd.xlane.f32.xlu1 %v820_v2 }
 0x27f   : > { %1569 = vmatprep.mubr.msk.bf16.mxu0 %vm720_vm0, %v881_v3  ;;  %v756_v52 = vpop.xlane.xlu1 %755 }
 0x280   : > { %v1694_v8 = vpop.eup %1693  ;;  %1703 = vpow2.f32 %v803_v4  ;;  %v805_v9 = vmul.f32 1.442695, %v779_v7  ;;  %v780_v55 = vsub.f32 %v2006_v53, %v756_v52  ;;  %1570 = vmatmul.mubr.msk.bf16.vlgmr.msra.gmra.mrb[16].mxu0 %vm720_vm0, %v882_v62  ;;  %v1677_v7 = vld [vmem:[%s2156_s5] sm:$0xff]   ;;  %v1678_v52 = vld [vmem:[%s2156_s5 + $0x8] sm:$0xff]  }
 0x281   : > { %v759_v10 = vpop.xlane.xlu0 %758  ;;  %v829_v11 = vsel %vm720_vm0, %v1694_v8, 0.0  ;;  %1585 = vmatprep.subr.bf16.mxu1 %v1677_v7 }
 0x282   : > { %v1696_v13 = vpop.eup %1695  ;;  %1705 = vpow2.f32 %v805_v9  ;;  %v807_v50 = vmul.f32 1.442695, %v780_v55  ;;  %v781_v14 = vsub.f32 %v2020_v60, %v759_v10  ;;  %830 = vadd.xlane.f32.xlu0 %v829_v11  ;;  %827 = vadd.xlane.f32.xlu1 %v826_v12  ;;  %v1680_v9 = vld [vmem:[%s2156_s5 + $0x18] sm:$0xff]   ;;  %v1681_v55 = vld [vmem:[%s2156_s5 + $0x20] sm:$0xff]   ;;  %v1682_v10 = vld [vmem:[%s2156_s5 + $0x28] sm:$0xff]  }
 0x283   : > { %v762_v15 = vpop.xlane.xlu1 %761  ;;  %v883_v18 = vpack.c.bf16 %v1696_v13, %v1694_v8  ;;  %v832_v37 = vsel %vm720_vm0, %v1696_v13, 0.0  ;;  %1586 = vmatpush3.bf16.msra.mxu1 %v1677_v7  ;;  %v1679_v8 = vld [vmem:[%s2156_s5 + $0x10] sm:$0xff]   ;;  %v1684_v12 = vld [vmem:[%s2156_s5 + $0x38] sm:$0xff]  }
 0x284   : > { %v1698_v21 = vpop.eup %1697  ;;  %1707 = vpow2.f32 %v807_v50  ;;  %v809_v22 = vmul.f32 1.442695, %v781_v14  ;;  %v782_v53 = vsub.f32 %v2026_v63, %v762_v15  ;;  %1587 = vmatprep.subr.bf16.mxu1 %v1678_v52  ;;  %v1683_v11 = vld [vmem:[%s2156_s5 + $0x30] sm:$0xff]  }
 0x285   : > { %1573 = vmatprep.mubr.msk.bf16.mxu0 %vm720_vm0, %v883_v18  ;;  %v765_v27 = vpop.xlane.xlu0 %764  ;;  %v835_v28 = vsel %vm720_vm0, %v1698_v21, 0.0 }
 0x286   : > { %v1700_v39 = vpop.eup %1699  ;;  %1709 = vpow2.f32 %v809_v22  ;;  %v811_v41 = vmul.f32 1.442695, %v782_v53  ;;  %v783_v60 = vsub.f32 %v2016_v58, %v765_v27  ;;  %836 = vadd.xlane.f32.xlu0 %v835_v28  ;;  %833 = vadd.xlane.f32.xlu1 %v832_v37 }
 0x287   : > { %v768_v33 = vpop.xlane.xlu1 %767  ;;  %v884_v34 = vpack.c.bf16 %v1700_v39, %v1698_v21  ;;  %v838_v48 = vsel %vm720_vm0, %v1700_v39, 0.0  ;;  %1588 = vmatpush3.bf16.msra.mxu1 %v1678_v52 }
 0x288   : > { %v1702_v42 = vpop.eup %1701  ;;  %1711 = vpow2.f32 %v811_v41  ;;  %v813_v46 = vmul.f32 1.442695, %v783_v60  ;;  %v784_v63 = vsub.f32 %v2022_v61, %v768_v33  ;;  %1589 = vmatprep.subr.bf16.mxu1 %v1679_v8 }
 0x289   : > { %1574 = vmatmul.mubr.msk.bf16.gmra.mrb[20].mxu0 %vm720_vm0, %v884_v34  ;;  %v841_v38 = vsel %vm720_vm0, %v1702_v42, 0.0 }
 0x28a   : > { %v1704_v40 = vpop.eup %1703  ;;  %1713 = vpow2.f32 %v813_v46  ;;  %v815_v49 = vmul.f32 1.442695, %v784_v63  ;;  %842 = vadd.xlane.f32.xlu0 %v841_v38  ;;  %839 = vadd.xlane.f32.xlu1 %v838_v48 }
 0x28b   : > { %v885_v58 = vpack.c.bf16 %v1704_v40, %v1702_v42  ;;  %v844_v61 = vsel %vm720_vm0, %v1704_v40, 0.0  ;;  %1590 = vmatpush3.bf16.msra.mxu1 %v1679_v8 }
 0x28c   : > { %v1706_v51 = vpop.eup %1705  ;;  %1715 = vpow2.f32 %v815_v49  ;;  %1591 = vmatprep.subr.bf16.mxu1 %v1680_v9 }
 0x28d   : > { %1577 = vmatprep.mubr.msk.bf16.mxu0 %vm720_vm0, %v885_v58  ;;  %v847_v54 = vsel %vm720_vm0, %v1706_v51, 0.0 }
 0x28e   : > { %v1708_v44 = vpop.eup %1707  ;;  %848 = vadd.xlane.f32.xlu0 %v847_v54  ;;  %845 = vadd.xlane.f32.xlu1 %v844_v61 }
 0x28f   : > { %v886_v56 = vpack.c.bf16 %v1708_v44, %v1706_v51  ;;  %v850_v59 = vsel %vm720_vm0, %v1708_v44, 0.0  ;;  %1592 = vmatpush3.bf16.msra.mxu1 %v1680_v9 }
 0x290   : > { %v1710_v47 = vpop.eup %1709  ;;  %1593 = vmatprep.subr.bf16.mxu1 %v1681_v55 }
 0x291   : > { %1578 = vmatmul.mubr.msk.bf16.gmra.mrb[24].mxu0 %vm720_vm0, %v886_v56  ;;  %v853_v57 = vsel %vm720_vm0, %v1710_v47, 0.0 }
 0x292   : > { %v1712_v62 = vpop.eup %1711  ;;  %854 = vadd.xlane.f32.xlu0 %v853_v57  ;;  %851 = vadd.xlane.f32.xlu1 %v850_v59 }
 0x293   : > { %v887_v43 = vpack.c.bf16 %v1712_v62, %v1710_v47  ;;  %v856_v45 = vsel %vm720_vm0, %v1712_v62, 0.0  ;;  %1594 = vmatpush3.bf16.msra.mxu1 %v1681_v55 }
 0x294   : > { %v1714_v0 = vpop.eup %1713  ;;  %1595 = vmatprep.subr.bf16.mxu1 %v1682_v10 }
 0x295   : > { %1581 = vmatprep.mubr.msk.bf16.mxu0 %vm720_vm0, %v887_v43  ;;  %v859_v1 = vsel %vm720_vm0, %v1714_v0, 0.0 }
 0x296   : > { %v1716_v2 = vpop.eup %1715  ;;  %860 = vadd.xlane.f32.xlu0 %v859_v1  ;;  %857 = vadd.xlane.f32.xlu1 %v856_v45 }
 0x297   : > { %v888_v3 = vpack.c.bf16 %v1716_v2, %v1714_v0  ;;  %v862_v4 = vsel %vm720_vm0, %v1716_v2, 0.0  ;;  %1596 = vmatpush3.bf16.msra.mxu1 %v1682_v10 }
 0x298   : > { %1597 = vmatprep.subr.bf16.mxu1 %v1683_v11 }
 0x299   : > { %1582 = vmatmul.mubr.msk.bf16.gmra.mrb[28].mxu0 %vm720_vm0, %v888_v3 }
 0x29a   : > { %863 = vadd.xlane.f32.xlu1 %v862_v4 }
 0x29b   : > { %1598 = vmatpush3.bf16.msra.mxu1 %v1683_v11 }
 0x29c   : > { %1599 = vmatprep.subr.bf16.mxu1 %v1684_v12 }
 0x29f   : > { %1600 = vmatpush3.bf16.msra.mxu1 %v1684_v12 }
 0x307   : > { %v819_v13 = vpop.xlane.xlu0 %818 }
 0x308   : > { %1717 = vrcp.f32 %v819_v13 }
 0x30b   : > { %v822_v50 = vpop.xlane.xlu1 %821  ;;  %v825_v14 = vpop.xlane.xlu0 %824 }
 0x30c   : > { %1719 = vrcp.f32 %v825_v14 }
 0x30f   : > { %v828_v15 = vpop.xlane.xlu1 %827  ;;  %v831_v18 = vpop.xlane.xlu0 %830 }
 0x310   : > { %1721 = vrcp.f32 %v828_v15 }
 0x311   : > { %1723 = vrcp.f32 %v822_v50 }
 0x312   : > { %1725 = vrcp.f32 %v831_v18  ;;  %v1718_v37 = vpop.eup %1717 }
 0x313   : > { %v834_v21 = vpop.xlane.xlu1 %833  ;;  %v837_v22 = vpop.xlane.xlu0 %836 }
 0x314   : > { %1727 = vrcp.f32 %v837_v22 }
 0x316   : > { %v1720_v41 = vpop.eup %1719 }
 0x317   : > { %v840_v53 = vpop.xlane.xlu1 %839  ;;  %v843_v27 = vpop.xlane.xlu0 %842 }
 0x318   : > { %1729 = vrcp.f32 %v840_v53 }
 0x319   : > { %1731 = vrcp.f32 %v834_v21 }
 0x31a   : > { %v1722_v34 = vpop.eup %1721  ;;  %1733 = vrcp.f32 %v843_v27 }
 0x31b   : > { %v846_v28 = vpop.xlane.xlu1 %845  ;;  %v849_v60 = vpop.xlane.xlu0 %848 }
 0x31c   : > { %v1724_v63 = vpop.eup %1723  ;;  %1735 = vrcp.f32 %v849_v60 }
 0x31d   : > { %v1726_v56 = vpop.eup %1725 }
 0x31e   : > { %v1728_v57 = vpop.eup %1727 }
 0x31f   : > { %v852_v42 = vpop.xlane.xlu1 %851  ;;  %v855_v61 = vpop.xlane.xlu0 %854 }
 0x320   : > { %1737 = vrcp.f32 %v852_v42 }
 0x321   : > { %1739 = vrcp.f32 %v846_v28 }
 0x322   : > { %v1730_v62 = vpop.eup %1729  ;;  %1741 = vrcp.f32 %v855_v61 }
 0x323   : > { %v858_v44 = vpop.xlane.xlu1 %857  ;;  %v1732_v0 = vpop.eup %1731 }
 0x324   : > { %v861_v3 = vpop.xlane.xlu0 %860  ;;  %v1734_v55 = vpop.eup %1733 }
 0x325   : > { %1743 = vrcp.f32 %v861_v3 }
 0x326   : > { %v1736_v11 = vpop.eup %1735 }
 0x327   : > { %v864_v52 = vpop.xlane.xlu1 %863 }
 0x328   : > { %1745 = vrcp.f32 %v864_v52 }
 0x329   : > { %1747 = vrcp.f32 %v858_v44 }
 0x32a   : > { %v1738_v13 = vpop.eup %1737 }
 0x32b   : > { %v1740_v14 = vpop.eup %1739 }
 0x353   : > { %v1571_v39 = vpop.f32.mrb[16].mxu0 }
 0x354   : > { %v979_v33 = vpop.f32.mrb[17].mxu0  ;;  %v1044_v38 = vmul.f32 %v1720_v41, %v1571_v39 }
 0x355   : > { %v1572_v46 = vpop.f32.mrb[18].mxu0  ;;  %v1042_v49 = vmul.f32 %v1718_v37, %v979_v33  ;;  %v1742_v37 = vpop.eup %1741 }
 0x356   : > { %v1045_v48 = vmul.f32 %v1722_v34, %v1572_v46  ;;  %v982_v40 = vpop.f32.mrb[19].mxu0  ;;  %v1744_v41 = vpop.eup %1743 }
 0x357   : > { %v1043_v58 = vmul.f32 %v1724_v63, %v982_v40  ;;  %v1746_v33 = vpop.eup %1745 }
 0x358   : > { %v1059_v51 = vpack.c.bf16 %v1045_v48, %v1044_v38  ;;  %v1748_v42 = vpop.eup %1747 }
 0x359   : > { %v1058_v54 = vpack.c.bf16 %v1043_v58, %v1042_v49 }
 0x35b   : > { %1601 = vmatprep.mubr.bf16.mxu1 %v1058_v54 }
 0x35c   : > { %v1575_v47 = vpop.f32.mrb[20].mxu0  ;;  %1602 = vmatmul.mubr.bf16.vlgmr.msra.gmra.mrb[16].mxu1 %v1059_v51  ;;  %v1424_v51 = vld [vmem:[%s2157_s6] ss:$0 sm:$0xff] }
 0x35d   : > { %v995_v59 = vpop.f32.mrb[21].mxu0  ;;  %v1048_v1 = vmul.f32 %v1728_v57, %v1575_v47 }
 0x35e   : > { %v1576_v43 = vpop.f32.mrb[22].mxu0  ;;  %v1046_v4 = vmul.f32 %v1726_v56, %v995_v59 }
 0x35f   : > { %v1049_v45 = vmul.f32 %v1730_v62, %v1576_v43  ;;  %v998_v2 = vpop.f32.mrb[23].mxu0 }
 0x360   : > { %v1047_v7 = vmul.f32 %v1732_v0, %v998_v2 }
 0x361   : > { %v1061_v8 = vpack.c.bf16 %v1049_v45, %v1048_v1 }
 0x362   : > { %v1060_v9 = vpack.c.bf16 %v1047_v7, %v1046_v4 }
 0x364   : > { %v1579_v10 = vpop.f32.mrb[24].mxu0  ;;  %1605 = vmatprep.mubr.bf16.mxu1 %v1060_v9 }
 0x365   : > { %v1011_v12 = vpop.f32.mrb[25].mxu0  ;;  %1606 = vmatmul.mubr.bf16.gmra.mrb[20].mxu1 %v1061_v8  ;;  %v1052_v15 = vmul.f32 %v1736_v11, %v1579_v10 }
 0x366   : > { %v1580_v50 = vpop.f32.mrb[26].mxu0  ;;  %v1050_v22 = vmul.f32 %v1734_v55, %v1011_v12 }
 0x367   : > { %v1053_v18 = vmul.f32 %v1738_v13, %v1580_v50  ;;  %v1014_v21 = vpop.f32.mrb[27].mxu0 }
 0x368   : > { %v1051_v53 = vmul.f32 %v1740_v14, %v1014_v21 }
 0x369   : > { %v1063_v27 = vpack.c.bf16 %v1053_v18, %v1052_v15 }
 0x36a   : > { %v1062_v28 = vpack.c.bf16 %v1051_v53, %v1050_v22 }
 0x36c   : > { %v1583_v39 = vpop.f32.mrb[28].mxu0  ;;  %1609 = vmatprep.mubr.bf16.mxu1 %v1062_v28 }
 0x36d   : > { %v1027_v60 = vpop.f32.mrb[29].mxu0  ;;  %1610 = vmatmul.mubr.bf16.gmra.mrb[24].mxu1 %v1063_v27  ;;  %v1056_v46 = vmul.f32 %v1744_v41, %v1583_v39 }
 0x36e   : > { %v1584_v34 = vpop.f32.mrb[30].mxu0  ;;  %v1054_v48 = vmul.f32 %v1742_v37, %v1027_v60 }
 0x36f   : > { %v1057_v63 = vmul.f32 %v1746_v33, %v1584_v34  ;;  %v1030_v38 = vpop.f32.mrb[31].mxu0 }
 0x370   : > { %v1055_v40 = vmul.f32 %v1748_v42, %v1030_v38 }
 0x371   : > { %v1065_v49 = vpack.c.bf16 %v1057_v63, %v1056_v46 }
 0x372   : > { %v1064_v58 = vpack.c.bf16 %v1055_v40, %v1054_v48 }
 0x374   : > { %1613 = vmatprep.mubr.bf16.mxu1 %v1064_v58 }
 0x375   : > { %1614 = vmatmul.mubr.bf16.gmra.mrb[28].mxu1 %v1065_v49 }
 0x42f   : > { %v1603_v54 = vpop.f32.mrb[16].mxu1 }
 0x430   : > { %v1180_v61 = vadd.f32 %v1603_v54, %v1424_v51  ;;  %v1171_v44 = vpop.f32.mrb[17].mxu1 }
 0x431   : > { %v1172_v56 = vadd.f32 %v1424_v51, %v1171_v44  ;;  %v1604_v47 = vpop.f32.mrb[18].mxu1 }
 0x432   : > { %v1236_v57 = vadd.f32 %v1180_v61, %v1918_v16  ;;  %v1183_v59 = vadd.f32 %v1604_v47, %v1424_v51  ;;  %v1174_v62 = vpop.f32.mrb[19].mxu1 }
 0x433   : > { %v1234_v43 = vadd.f32 %v1172_v56, %v1894_v5  ;;  %v1175_v0 = vadd.f32 %v1424_v51, %v1174_v62 }
 0x434   : > { %1252 = vst [vmem:[%s2102_s11 + $0x10] sm:$0xff] %v1236_v57  ;;  %v1237_v1 = vadd.f32 %v1183_v59, %v1921_v17 }
 0x435   : > { %1250 = vst [vmem:[%s2102_s11] sm:$0xff] %v1234_v43  ;;  %v1235_v45 = vadd.f32 %v1175_v0, %v1897_v6 }
 0x436   : > { %1253 = vst [vmem:[%s2102_s11 + $0x18] sm:$0xff] %v1237_v1 }
 0x437   : > { %1251 = vst [vmem:[%s2102_s11 + $0x8] sm:$0xff] %v1235_v45 }
 0x438   : > { %v1607_v2 = vpop.f32.mrb[20].mxu1 }
 0x439   : > { %v1196_v3 = vadd.f32 %v1607_v2, %v1424_v51  ;;  %v1187_v16 = vpop.f32.mrb[21].mxu1 }
 0x43a   : > { %v1188_v4 = vadd.f32 %v1424_v51, %v1187_v16  ;;  %v1608_v7 = vpop.f32.mrb[22].mxu1 }
 0x43b   : > { %v1240_v5 = vadd.f32 %v1196_v3, %v1935_v23  ;;  %v1199_v52 = vadd.f32 %v1608_v7, %v1424_v51  ;;  %v1190_v8 = vpop.f32.mrb[23].mxu1 }
 0x43c   : > { %v1238_v9 = vadd.f32 %v1188_v4, %v1925_v19  ;;  %v1191_v17 = vadd.f32 %v1424_v51, %v1190_v8 }
 0x43d   : > { %1256 = vst [vmem:[%s2102_s11 + $0x30] sm:$0xff] %v1240_v5  ;;  %v1241_v6 = vadd.f32 %v1199_v52, %v1938_v24 }
 0x43e   : > { %1254 = vst [vmem:[%s2102_s11 + $0x20] sm:$0xff] %v1238_v9  ;;  %v1239_v55 = vadd.f32 %v1191_v17, %v1928_v20 }
 0x43f   : > { %1257 = vst [vmem:[%s2102_s11 + $0x38] sm:$0xff] %v1241_v6 }
 0x440   : > { %1255 = vst [vmem:[%s2102_s11 + $0x28] sm:$0xff] %v1239_v55  ;;  %v1611_v10 = vpop.f32.mrb[24].mxu1 }
 0x441   : > { %v1212_v11 = vadd.f32 %v1611_v10, %v1424_v51  ;;  %v1203_v23 = vpop.f32.mrb[25].mxu1 }
 0x442   : > { %v1204_v12 = vadd.f32 %v1424_v51, %v1203_v23  ;;  %v1612_v13 = vpop.f32.mrb[26].mxu1 }
 0x443   : > { %v1244_v19 = vadd.f32 %v1212_v11, %v1951_v29  ;;  %v1215_v50 = vadd.f32 %v1612_v13, %v1424_v51  ;;  %v1206_v14 = vpop.f32.mrb[27].mxu1 }
 0x444   : > { %v1242_v15 = vadd.f32 %v1204_v12, %v1941_v25  ;;  %v1207_v24 = vadd.f32 %v1424_v51, %v1206_v14 }
 0x445   : > { %1260 = vst [vmem:[%s2102_s11 + $0x50] sm:$0xff] %v1244_v19  ;;  %v1245_v20 = vadd.f32 %v1215_v50, %v1954_v30 }
 0x446   : > { %1258 = vst [vmem:[%s2102_s11 + $0x40] sm:$0xff] %v1242_v15  ;;  %v1243_v18 = vadd.f32 %v1207_v24, %v1944_v26 }
 0x447   : > { %1261 = vst [vmem:[%s2102_s11 + $0x58] sm:$0xff] %v1245_v20 }
 0x448   : > { %1259 = vst [vmem:[%s2102_s11 + $0x48] sm:$0xff] %v1243_v18  ;;  %v1615_v21 = vpop.f32.mrb[28].mxu1 }
 0x449   : > { %v1228_v22 = vadd.f32 %v1615_v21, %v1424_v51  ;;  %v1219_v29 = vpop.f32.mrb[29].mxu1 }
 0x44a   : > { %v1220_v53 = vadd.f32 %v1424_v51, %v1219_v29  ;;  %v1616_v27 = vpop.f32.mrb[30].mxu1 }
 0x44b   : > { %v1248_v25 = vadd.f32 %v1228_v22, %v1967_v35  ;;  %v1231_v28 = vadd.f32 %v1616_v27, %v1424_v51  ;;  %v1222_v37 = vpop.f32.mrb[31].mxu1 }
 0x44c   : > { %v1246_v39 = vadd.f32 %v1220_v53, %v1957_v31  ;;  %v1223_v30 = vadd.f32 %v1424_v51, %v1222_v37 }
 0x44d   : > { %1264 = vst [vmem:[%s2102_s11 + $0x70] sm:$0xff] %v1248_v25  ;;  %v1249_v41 = vadd.f32 %v1231_v28, %v1970_v36 }
 0x44e   : > { %1262 = vst [vmem:[%s2102_s11 + $0x60] sm:$0xff] %v1246_v39  ;;  %v1247_v26 = vadd.f32 %v1223_v30, %v1960_v32 }
 0x44f   : > { %1265 = vst [vmem:[%s2102_s11 + $0x78] sm:$0xff] %v1249_v41 }
 0x450   : > { %1263 = vst [vmem:[%s2102_s11 + $0x68] sm:$0xff] %v1247_v26 }
 0x451 PF: > { %s17_s28 = sadd.s32 1, %s1787_s28   ;;  %s2159_s24 = smov %s1779_s26 }
 0x452   : > { %p14_p7 = scmp.ge.s32.totalorder %s17_s28, 6   ;;  %s2160_s25 = smov %s1783_s27 }
 0x453   : > { %s2161_s26 = smov %s2164_s29  ;;  %s2162_s27 = smov %s2168_s30 }
 0x454   :  { %16 = sbr.rel (!%p14_p7) target bundleno = 3 (0x3), region = 84 }

</bundles_post_ra>
